<compile_context>
chip_gen: v5e
topology: v5e:2x2
jax: 0.10.0
libtpu: 0.0.40
codegen_flags: <defaults>
</compile_context>

<pallas_src>
import jax
import jax.numpy as jnp
from jax.experimental import pallas as pl
from jax.experimental.pallas import tpu as pltpu


def mlp_kernel(x_ref, w0_ref, b0_ref, w1_ref, b1_ref, w2_ref, b2_ref, o_ref):
    # x / w* arrive as bfloat16 (halved HBM traffic); biases, accumulation and the
    # log_softmax are float32. MXU takes bf16 natively on v5e/v6e/v7x.
    x = x_ref[...]                                                    # (B, D) bf16

    h0 = jnp.dot(x, w0_ref[...], preferred_element_type=jnp.float32) + b0_ref[...]
    h0 = jnp.maximum(h0, 0.0)                                         # ReLU, f32

    h1 = jnp.dot(h0.astype(jnp.bfloat16), w1_ref[...],
                 preferred_element_type=jnp.float32) + b1_ref[...]
    h1 = jnp.maximum(h1, 0.0)                                         # ReLU, f32

    logits = jnp.dot(h1.astype(jnp.bfloat16), w2_ref[...],
                     preferred_element_type=jnp.float32) + b2_ref[...]

    # log_softmax along dim=1 (classes), numerically stable, f32 throughout.
    m = jnp.max(logits, axis=-1, keepdims=True)
    shifted = logits - m
    lse = jnp.log(jnp.sum(jnp.exp(shifted), axis=-1, keepdims=True))
    o_ref[...] = shifted - lse


def mlp_forward(x_nchw, params):
    """x_nchw: (B, C, H, W). Returns (B, 10) float32 log-probabilities."""
    w0, b0, w1, b1, w2, b2 = params
    B = x_nchw.shape[0]

    # torch.flatten(x, 1); cast activations + weights to bf16 *outside* the kernel.
    x = x_nchw.reshape(B, -1).astype(jnp.bfloat16)
    D = x.shape[1]
    w0 = w0.astype(jnp.bfloat16)
    w1 = w1.astype(jnp.bfloat16)
    w2 = w2.astype(jnp.bfloat16)
    b0 = b0.astype(jnp.float32)
    b1 = b1.astype(jnp.float32)
    b2 = b2.astype(jnp.float32)

    full = lambda shape: pl.BlockSpec(shape, lambda: tuple(0 for _ in shape))

    return pl.pallas_call(
        mlp_kernel,
        out_shape=jax.ShapeDtypeStruct((B, 10), jnp.float32),
        grid=(),
        in_specs=[
            full((B, D)),
            full((D, 512)), full((1, 512)),
            full((512, 128)), full((1, 128)),
            full((128, 10)), full((1, 10)),
        ],
        out_specs=full((B, 10)),
        # Real VMEM footprint is ~1.3 MB (bf16 weights) + double-buffering; 8 MiB is
        # generous headroom and leaves room for compiler scratch on v7x's 64 MiB VMEM.
        compiler_params=pltpu.CompilerParams(vmem_limit_bytes=8 << 20),
    )(x, w0, b0, w1, b1, w2, b2)


def init_params(key, input_size):
    """Deterministic init mimicking nn.Linear shapes (stored as (in, out)), f32 master."""
    ks = jax.random.split(key, 6)

    def linear(kw, kb, fan_in, fan_out):
        bound = 1.0 / jnp.sqrt(fan_in)
        w = jax.random.uniform(kw, (fan_in, fan_out), jnp.float32, -bound, bound)
        b = jax.random.uniform(kb, (1, fan_out), jnp.float32, -bound, bound)
        return w, b

    w0, b0 = linear(ks[0], ks[1], input_size, 512)
    w1, b1 = linear(ks[2], ks[3], 512, 128)
    w2, b2 = linear(ks[4], ks[5], 128, 10)
    return (w0, b0, w1, b1, w2, b2)


def mlp_reference_f32(x_nchw, params):
    """Pure-JAX full-f32 reference (sanity check with loose tolerance vs bf16 kernel)."""
    w0, b0, w1, b1, w2, b2 = params
    x = x_nchw.reshape(x_nchw.shape[0], -1).astype(jnp.float32)
    h0 = jnp.maximum(x @ w0 + b0, 0.0)
    h1 = jnp.maximum(h0 @ w1 + b1, 0.0)
    logits = h1 @ w2 + b2
    return jax.nn.log_softmax(logits, axis=1)


def mlp_reference_bf16(x_nchw, params):
    """Pure-JAX reference with the same bf16-inputs / f32-accumulation recipe as the kernel."""
    w0, b0, w1, b1, w2, b2 = params
    x = x_nchw.reshape(x_nchw.shape[0], -1).astype(jnp.bfloat16)
    w0 = w0.astype(jnp.bfloat16)
    w1 = w1.astype(jnp.bfloat16)
    w2 = w2.astype(jnp.bfloat16)
    h0 = jnp.dot(x, w0, preferred_element_type=jnp.float32) + b0
    h0 = jnp.maximum(h0, 0.0)
    h1 = jnp.dot(h0.astype(jnp.bfloat16), w1, preferred_element_type=jnp.float32) + b1
    h1 = jnp.maximum(h1, 0.0)
    logits = jnp.dot(h1.astype(jnp.bfloat16), w2, preferred_element_type=jnp.float32) + b2
    return jax.nn.log_softmax(logits, axis=1)


if __name__ == "__main__":
    key = jax.random.PRNGKey(0)
    k_x, k_p = jax.random.split(key)

    # Small NCHW input: batch=8, channels=4, spatial=16x16 -> input_size=1024
    B, C, H, W = 8, 4, 16, 16
    x = jax.random.normal(k_x, (B, C, H, W), dtype=jnp.float32)
    params = init_params(k_p, C * H * W)

    out = mlp_forward(x, params)
    out = jax.block_until_ready(out)
    assert out.shape == (B, 10)
    assert out.dtype == jnp.float32

    # Matching-precision reference (bf16 inputs, f32 accumulation) -> tight tolerance.
    ref_bf16 = mlp_reference_bf16(x, params)
    assert jnp.allclose(out, ref_bf16, atol=1e-3, rtol=1e-3), "mismatch vs bf16-matched reference"

    # Full-f32 reference -> loose tolerance (bf16 weight quantization noise).
    ref_f32 = mlp_reference_f32(x, params)
    assert jnp.allclose(out, ref_f32, atol=5e-2, rtol=5e-2), "mismatch vs f32 reference"

    print("KERNEL_OK")
</pallas_src>

<mosaic_0001>
module attributes {stable_mosaic.version = 11 : i64} {
  func.func @mlp_kernel(%arg0: memref<8x1024xbf16, #tpu.memory_space<vmem>>, %arg1: memref<1024x512xbf16, #tpu.memory_space<vmem>>, %arg2: memref<1x512xf32, #tpu.memory_space<vmem>>, %arg3: memref<512x128xbf16, #tpu.memory_space<vmem>>, %arg4: memref<1x128xf32, #tpu.memory_space<vmem>>, %arg5: memref<128x10xbf16, #tpu.memory_space<vmem>>, %arg6: memref<1x10xf32, #tpu.memory_space<vmem>>, %arg7: memref<8x10xf32, #tpu.memory_space<vmem>>) attributes {dimension_semantics = [], scalar_prefetch = 0 : i64, scratch_operands = 0 : i64, tpu.core_type = #tpu.core_type<tc>} {
    %c0 = arith.constant 0 : index
    %c0_0 = arith.constant 0 : index
    %0 = vector.load %arg0[%c0, %c0_0] : memref<8x1024xbf16, #tpu.memory_space<vmem>>, vector<8x1024xbf16>
    %c0_1 = arith.constant 0 : index
    %c0_2 = arith.constant 0 : index
    %1 = vector.load %arg1[%c0_1, %c0_2] : memref<1024x512xbf16, #tpu.memory_space<vmem>>, vector<1024x512xbf16>
    %cst = arith.constant dense<0.000000e+00> : vector<8x512xf32>
    %2 = tpu.matmul %0, %1, %cst {dimension_numbers = #tpu.dot_dimension_numbers<[1], [0], [0], [1], [0, 0, 1, 1], [], []>} : vector<8x1024xbf16>, vector<1024x512xbf16>, vector<8x512xf32> -> vector<8x512xf32>
    %c0_3 = arith.constant 0 : index
    %c0_4 = arith.constant 0 : index
    %3 = vector.load %arg2[%c0_3, %c0_4] : memref<1x512xf32, #tpu.memory_space<vmem>>, vector<1x512xf32>
    %4 = vector.broadcast %3 : vector<1x512xf32> to vector<8x512xf32>
    %5 = arith.addf %2, %4 : vector<8x512xf32>
    %cst_5 = arith.constant 0.000000e+00 : f32
    %6 = vector.broadcast %cst_5 : f32 to vector<8x512xf32>
    %7 = arith.maximumf %5, %6 : vector<8x512xf32>
    %8 = arith.truncf %7 : vector<8x512xf32> to vector<8x512xbf16>
    %c0_6 = arith.constant 0 : index
    %c0_7 = arith.constant 0 : index
    %9 = vector.load %arg3[%c0_6, %c0_7] : memref<512x128xbf16, #tpu.memory_space<vmem>>, vector<512x128xbf16>
    %cst_8 = arith.constant dense<0.000000e+00> : vector<8x128xf32>
    %10 = tpu.matmul %8, %9, %cst_8 {dimension_numbers = #tpu.dot_dimension_numbers<[1], [0], [0], [1], [0, 0, 1, 1], [], []>} : vector<8x512xbf16>, vector<512x128xbf16>, vector<8x128xf32> -> vector<8x128xf32>
    %c0_9 = arith.constant 0 : index
    %c0_10 = arith.constant 0 : index
    %11 = vector.load %arg4[%c0_9, %c0_10] : memref<1x128xf32, #tpu.memory_space<vmem>>, vector<1x128xf32>
    %12 = vector.broadcast %11 : vector<1x128xf32> to vector<8x128xf32>
    %13 = arith.addf %10, %12 : vector<8x128xf32>
    %cst_11 = arith.constant 0.000000e+00 : f32
    %14 = vector.broadcast %cst_11 : f32 to vector<8x128xf32>
    %15 = arith.maximumf %13, %14 : vector<8x128xf32>
    %16 = arith.truncf %15 : vector<8x128xf32> to vector<8x128xbf16>
    %c0_12 = arith.constant 0 : index
    %c0_13 = arith.constant 0 : index
    %17 = vector.load %arg5[%c0_12, %c0_13] : memref<128x10xbf16, #tpu.memory_space<vmem>>, vector<128x10xbf16>
    %cst_14 = arith.constant dense<0.000000e+00> : vector<8x10xf32>
    %18 = tpu.matmul %16, %17, %cst_14 {dimension_numbers = #tpu.dot_dimension_numbers<[1], [0], [0], [1], [0, 0, 1, 1], [], []>} : vector<8x128xbf16>, vector<128x10xbf16>, vector<8x10xf32> -> vector<8x10xf32>
    %c0_15 = arith.constant 0 : index
    %c0_16 = arith.constant 0 : index
    %19 = vector.load %arg6[%c0_15, %c0_16] : memref<1x10xf32, #tpu.memory_space<vmem>>, vector<1x10xf32>
    %20 = vector.broadcast %19 : vector<1x10xf32> to vector<8x10xf32>
    %21 = arith.addf %18, %20 : vector<8x10xf32>
    %cst_17 = arith.constant dense<0xFF800000> : vector<8xf32>
    %22 = vector.multi_reduction <maximumf>, %21, %cst_17 [1] : vector<8x10xf32> to vector<8xf32>
    %23 = vector.shape_cast %22 : vector<8xf32> to vector<8x1xf32>
    %24 = vector.broadcast %23 : vector<8x1xf32> to vector<8x10xf32>
    %25 = arith.subf %21, %24 : vector<8x10xf32>
    %26 = math.exp %25 : vector<8x10xf32>
    %cst_18 = arith.constant dense<0.000000e+00> : vector<8xf32>
    %27 = vector.multi_reduction <add>, %26, %cst_18 [1] : vector<8x10xf32> to vector<8xf32>
    %28 = vector.shape_cast %27 : vector<8xf32> to vector<8x1xf32>
    %29 = math.log %28 : vector<8x1xf32>
    %30 = vector.broadcast %29 : vector<8x1xf32> to vector<8x10xf32>
    %31 = arith.subf %25, %30 : vector<8x10xf32>
    %c0_19 = arith.constant 0 : index
    %c0_20 = arith.constant 0 : index
    %32 = vector.load %arg7[%c0_19, %c0_20] : memref<8x10xf32, #tpu.memory_space<vmem>>, vector<8x10xf32>
    tpu.vector_store %arg7[%c0_19, %c0_20], %31 {strides = array<i32>} : memref<8x10xf32, #tpu.memory_space<vmem>>, vector<8x10xf32>,
    return
  }
}

</mosaic_0001>

<bundles_post_ra>
// kernel: tpu_custom_call.1
= control target key start
LH: loop header
LB: loop body
LE: loop exit
PB: predicated region body
PF: predicated region fallthrough
CT: control target
= control target key end

     0   :  { %12 = vsyncpa [#allocation3], 0  ;;  %s4235_s0 = inlined_call_operand.vmem [shape: bf16[8,1024], index: 0, kind: input, shape index: {}]   ;;  %s4236_s1 = inlined_call_operand.hbm [shape: bf16[1024,512], index: 1, kind: input, shape index: {}]   ;;  %s4237_s2 = inlined_call_operand.vmem [shape: f32[1,512], index: 2, kind: input, shape index: {}]   ;;  %s4238_s3 = inlined_call_operand.hbm [shape: bf16[512,128], index: 3, kind: input, shape index: {}]   ;;  %s4239_s4 = inlined_call_operand.vmem [shape: f32[1,128], index: 4, kind: input, shape index: {}]   ;;  %s4240_s5 = inlined_call_operand.vmem [shape: bf16[128,10], index: 5, kind: input, shape index: {}]   ;;  %s4241_s6 = inlined_call_operand.vmem [shape: f32[1,10], index: 6, kind: input, shape index: {}]   ;;  %s4242_s7 = inlined_call_operand.hbm [shape: f32[8,10], index: 7, kind: output, shape index: {}]  }
   0x1   :  { %13 = vsyncpa [#allocation6], 0 }
   0x2   :  { %14 = vsyncpa [#allocation4], 0  ;;  %s21_s26 = sshll.u32 %s4236_s1, 4  ;;  %s4059_s27 = smov [#allocation2]   ;;  %s22_s26 = int_to_ptr.hbm [resolvable:$true] %s21_s26 }
   0x3   :  { %s23_s28 = sshll.u32 %s4059_s27, 4  ;;  %s36_s8 = sshll.u32 %s4238_s3, 4  ;;  %s24_s28 = int_to_ptr.vmem [resolvable:$true] %s23_s28  ;;  %s37_s8 = int_to_ptr.hbm [resolvable:$true] %s36_s8 }
   0x4   :  { %s4060_s9 = smov 256   ;;  %s4061_s10 = smov 16  }
   0x5   :  { %29 = dma.hbm_to_vmem [thread:$0]  %s22_s26, 32768, %s24_s28, [#allocation3], %s4060_s9, %s4060_s9, %s4061_s10  }
   0x6   :  { %s4062_s11 = smov [#allocation5]   ;;  %s4063_s13 = smov 64  }
   0x7   :  { %s38_s12 = sshll.u32 %s4062_s11, 4  ;;  %s4064_s14 = smov 4   ;;  %s39_s12 = int_to_ptr.vmem [resolvable:$true] %s38_s12 }
   0x8   :  { %44 = dma.hbm_to_vmem [thread:$0]  %s37_s8, 4096, %s39_s12, [#allocation6], %s4063_s13, %s4063_s13, %s4064_s14  }
   0x9   :  { %4053 = dma.done.wait [#allocation3], 32768  }
   0xa   :  { %4054 = vsyncadd [#allocation3], 4294934528 }
   0xb   :  { %4055 = dma.done.wait [#allocation6], 4096  }
   0xc   :  { %4056 = vsyncadd [#allocation6], 4294963200  ;;  %v2602_v0 = vld [vmem:[#allocation2 + $0xe0] sm:$0xf]  ;;  %v3702_v1 = vld [vmem:[#allocation2 + $0xec] sm:$0xf0] }
   0xd   :  { %v2730_v2 = vld [vmem:[#allocation2 + $0x1e0] sm:$0xf]  ;;  %v2603_v3 = vor.u32 %v3702_v1, %v2602_v0  ;;  %v3734_v4 = vld [vmem:[#allocation2 + $0x1ec] sm:$0xf0]  ;;  %vm2456_vm0 = vcmask 80896   ;;  %s2477_s17 = sshll.u32 %s4242_s7, 4  ;;  %s2478_s17 = int_to_ptr.hbm [resolvable:$true] %s2477_s17 }
   0xe   :  { %v2858_v5 = vld [vmem:[#allocation2 + $0x2e0] sm:$0xf]  ;;  %v3766_v6 = vld [vmem:[#allocation2 + $0x2ec] sm:$0xf0]  ;;  %v2731_v7 = vor.u32 %v3734_v4, %v2730_v2 }
   0xf   :  { %v2859_v8 = vor.u32 %v3766_v6, %v2858_v5  ;;  %v2986_v9 = vld [vmem:[#allocation2 + $0x3e0] sm:$0xf]  ;;  %v3798_v10 = vld [vmem:[#allocation2 + $0x3ec] sm:$0xf0]  ;;  %1637 = vmatpush.bf16.msra.mxu0 %v2603_v3 }
  0x10   :  { %v2586_v11 = vld [vmem:[#allocation2 + $0xc0] sm:$0xf]  ;;  %v2987_v12 = vor.u32 %v3798_v10, %v2986_v9  ;;  %v3698_v13 = vld [vmem:[#allocation2 + $0xcc] sm:$0xf0]  ;;  %1650 = vmatpush.bf16.msra.mxu1 %v2731_v7 }
  0x11   :  { %v2714_v14 = vld [vmem:[#allocation2 + $0x1c0] sm:$0xf]  ;;  %v3730_v15 = vld [vmem:[#allocation2 + $0x1cc] sm:$0xf0]  ;;  %1663 = vmatpush.bf16.msra.mxu2 %v2859_v8  ;;  %v2587_v16 = vor.u32 %v3698_v13, %v2586_v11 }
  0x12   :  { %v2715_v17 = vor.u32 %v3730_v15, %v2714_v14  ;;  %v2842_v18 = vld [vmem:[#allocation2 + $0x2c0] sm:$0xf]  ;;  %v3762_v19 = vld [vmem:[#allocation2 + $0x2cc] sm:$0xf0]  ;;  %1676 = vmatpush.bf16.msra.mxu3 %v2987_v12 }
  0x13   :  { %v2970_v20 = vld [vmem:[#allocation2 + $0x3c0] sm:$0xf]  ;;  %v2843_v21 = vor.u32 %v3762_v19, %v2842_v18  ;;  %v3794_v22 = vld [vmem:[#allocation2 + $0x3cc] sm:$0xf0]  ;;  %1638 = vmatpush.bf16.msra.mxu0 %v2587_v16 }
  0x14   :  { %v2570_v23 = vld [vmem:[#allocation2 + $0xa0] sm:$0xf]  ;;  %v3694_v24 = vld [vmem:[#allocation2 + $0xac] sm:$0xf0]  ;;  %v2971_v25 = vor.u32 %v3794_v22, %v2970_v20  ;;  %1651 = vmatpush.bf16.msra.mxu1 %v2715_v17 }
  0x15   :  { %v2698_v26 = vld [vmem:[#allocation2 + $0x1a0] sm:$0xf]  ;;  %v3726_v27 = vld [vmem:[#allocation2 + $0x1ac] sm:$0xf0]  ;;  %v2571_v29 = vor.u32 %v3694_v24, %v2570_v23  ;;  %1664 = vmatpush.bf16.msra.mxu2 %v2843_v21 }
  0x16   :  { %v2826_v28 = vld [vmem:[#allocation2 + $0x2a0] sm:$0xf]  ;;  %v3758_v30 = vld [vmem:[#allocation2 + $0x2ac] sm:$0xf0]  ;;  %v2699_v33 = vor.u32 %v3726_v27, %v2698_v26  ;;  %1677 = vmatpush.bf16.msra.mxu3 %v2971_v25 }
  0x17   :  { %v2954_v31 = vld [vmem:[#allocation2 + $0x3a0] sm:$0xf]  ;;  %v3790_v32 = vld [vmem:[#allocation2 + $0x3ac] sm:$0xf0]  ;;  %v2827_v34 = vor.u32 %v3758_v30, %v2826_v28  ;;  %1639 = vmatpush.bf16.msra.mxu0 %v2571_v29 }
  0x18   :  { %v2554_v35 = vld [vmem:[#allocation2 + $0x80] sm:$0xf]  ;;  %v3690_v36 = vld [vmem:[#allocation2 + $0x8c] sm:$0xf0]  ;;  %v2955_v38 = vor.u32 %v3790_v32, %v2954_v31  ;;  %1652 = vmatpush.bf16.msra.mxu1 %v2699_v33 }
  0x19   :  { %v2682_v37 = vld [vmem:[#allocation2 + $0x180] sm:$0xf]  ;;  %v3722_v39 = vld [vmem:[#allocation2 + $0x18c] sm:$0xf0]  ;;  %v2555_v44 = vor.u32 %v3690_v36, %v2554_v35  ;;  %1665 = vmatpush.bf16.msra.mxu2 %v2827_v34 }
  0x1a   :  { %v2810_v40 = vld [vmem:[#allocation2 + $0x280] sm:$0xf]  ;;  %v3754_v41 = vld [vmem:[#allocation2 + $0x28c] sm:$0xf0]  ;;  %v2683_v45 = vor.u32 %v3722_v39, %v2682_v37  ;;  %1678 = vmatpush.bf16.msra.mxu3 %v2955_v38 }
  0x1b   :  { %v2938_v42 = vld [vmem:[#allocation2 + $0x380] sm:$0xf]  ;;  %v3786_v43 = vld [vmem:[#allocation2 + $0x38c] sm:$0xf0]  ;;  %v2811_v46 = vor.u32 %v3754_v41, %v2810_v40  ;;  %1640 = vmatpush.bf16.msra.mxu0 %v2555_v44 }
  0x1c   :  { %v2538_v47 = vld [vmem:[#allocation2 + $0x60] sm:$0xf]  ;;  %v3686_v48 = vld [vmem:[#allocation2 + $0x6c] sm:$0xf0]  ;;  %v2939_v50 = vor.u32 %v3786_v43, %v2938_v42  ;;  %1653 = vmatpush.bf16.msra.mxu1 %v2683_v45 }
  0x1d   :  { %v2666_v49 = vld [vmem:[#allocation2 + $0x160] sm:$0xf]  ;;  %v3718_v51 = vld [vmem:[#allocation2 + $0x16c] sm:$0xf0]  ;;  %v2539_v56 = vor.u32 %v3686_v48, %v2538_v47  ;;  %1666 = vmatpush.bf16.msra.mxu2 %v2811_v46 }
  0x1e   :  { %v2794_v52 = vld [vmem:[#allocation2 + $0x260] sm:$0xf]  ;;  %v3750_v53 = vld [vmem:[#allocation2 + $0x26c] sm:$0xf0]  ;;  %v2667_v57 = vor.u32 %v3718_v51, %v2666_v49  ;;  %1679 = vmatpush.bf16.msra.mxu3 %v2939_v50 }
  0x1f   :  { %v2922_v54 = vld [vmem:[#allocation2 + $0x360] sm:$0xf]  ;;  %v3782_v55 = vld [vmem:[#allocation2 + $0x36c] sm:$0xf0]  ;;  %v2795_v58 = vor.u32 %v3750_v53, %v2794_v52  ;;  %1641 = vmatpush.bf16.msra.mxu0 %v2539_v56 }
  0x20   :  { %v2522_v59 = vld [vmem:[#allocation2 + $0x40] sm:$0xf]  ;;  %v3682_v60 = vld [vmem:[#allocation2 + $0x4c] sm:$0xf0]  ;;  %v2923_v62 = vor.u32 %v3782_v55, %v2922_v54  ;;  %1654 = vmatpush.bf16.msra.mxu1 %v2667_v57 }
  0x21   :  { %v2650_v61 = vld [vmem:[#allocation2 + $0x140] sm:$0xf]  ;;  %v3714_v63 = vld [vmem:[#allocation2 + $0x14c] sm:$0xf0]  ;;  %v2523_v4 = vor.u32 %v3682_v60, %v2522_v59  ;;  %1667 = vmatpush.bf16.msra.mxu2 %v2795_v58 }
  0x22   :  { %v2778_v0 = vld [vmem:[#allocation2 + $0x240] sm:$0xf]  ;;  %v3746_v1 = vld [vmem:[#allocation2 + $0x24c] sm:$0xf0]  ;;  %v2651_v5 = vor.u32 %v3714_v63, %v2650_v61  ;;  %1680 = vmatpush.bf16.msra.mxu3 %v2923_v62 }
  0x23   :  { %v2906_v2 = vld [vmem:[#allocation2 + $0x340] sm:$0xf]  ;;  %v3778_v3 = vld [vmem:[#allocation2 + $0x34c] sm:$0xf0]  ;;  %v2779_v6 = vor.u32 %v3746_v1, %v2778_v0  ;;  %1642 = vmatpush.bf16.msra.mxu0 %v2523_v4 }
  0x24   :  { %v2506_v7 = vld [vmem:[#allocation2 + $0x20] sm:$0xf]  ;;  %v3678_v8 = vld [vmem:[#allocation2 + $0x2c] sm:$0xf0]  ;;  %v2907_v10 = vor.u32 %v3778_v3, %v2906_v2  ;;  %1655 = vmatpush.bf16.msra.mxu1 %v2651_v5  ;;  %v60_v2 = vld [vmem:[%s4235_s0 + $0x8] sm:$0xff] }
  0x25   :  { %v2634_v9 = vld [vmem:[#allocation2 + $0x120] sm:$0xf]  ;;  %v3710_v11 = vld [vmem:[#allocation2 + $0x12c] sm:$0xf0]  ;;  %v2507_v16 = vor.u32 %v3678_v8, %v2506_v7  ;;  %1668 = vmatpush.bf16.msra.mxu2 %v2779_v6  ;;  %v335_v8 = vunpack.c.l.b16 %v60_v2 }
  0x26   :  { %v2762_v12 = vld [vmem:[#allocation2 + $0x220] sm:$0xf]  ;;  %v3742_v13 = vld [vmem:[#allocation2 + $0x22c] sm:$0xf0]  ;;  %v2635_v19 = vor.u32 %v3710_v11, %v2634_v9  ;;  %1681 = vmatpush.bf16.msra.mxu3 %v2907_v10  ;;  %v336_v10 = vunpack.c.h.b16 %v60_v2 }
  0x27   :  { %v2890_v14 = vld [vmem:[#allocation2 + $0x320] sm:$0xf]  ;;  %v3774_v15 = vld [vmem:[#allocation2 + $0x32c] sm:$0xf0]  ;;  %v2763_v20 = vor.u32 %v3742_v13, %v2762_v12  ;;  %1643 = vmatpush.bf16.msra.mxu0 %v2507_v16 }
  0x28   :  { %v2490_v17 = vld [vmem:[#allocation2] sm:$0xf]  ;;  %v3674_v18 = vld [vmem:[#allocation2 + $0xc] sm:$0xf0]  ;;  %v2891_v24 = vor.u32 %v3774_v15, %v2890_v14  ;;  %1656 = vmatpush.bf16.msra.mxu1 %v2635_v19 }
  0x29   :  { %v2618_v21 = vld [vmem:[#allocation2 + $0x100] sm:$0xf]  ;;  %v3706_v22 = vld [vmem:[#allocation2 + $0x10c] sm:$0xf0]  ;;  %v2491_v31 = vor.u32 %v3674_v18, %v2490_v17  ;;  %1669 = vmatpush.bf16.msra.mxu2 %v2763_v20  ;;  %v4118_v18 = vpack.c.b16 %v335_v8, %v335_v8  ;;  %v4122_v20 = vpack.c.b16 %v336_v10, %v336_v10  ;;  %v3700_v8 = vld [vmem:[#allocation2 + $0xe4] sm:$0xf] }
  0x2a   :  { %v2746_v23 = vld [vmem:[#allocation2 + $0x200] sm:$0xf]  ;;  %v3738_v25 = vld [vmem:[#allocation2 + $0x20c] sm:$0xf0]  ;;  %v2619_v35 = vor.u32 %v3706_v22, %v2618_v21  ;;  %1682 = vmatpush.bf16.msra.mxu3 %v2891_v24  ;;  %v3732_v10 = vld [vmem:[#allocation2 + $0x1e4] sm:$0xf] }
  0x2b   :  { %v2874_v26 = vld [vmem:[#allocation2 + $0x300] sm:$0xf]  ;;  %v3770_v27 = vld [vmem:[#allocation2 + $0x30c] sm:$0xf0]  ;;  %v2747_v36 = vor.u32 %v3738_v25, %v2746_v23  ;;  %1644 = vmatpush.bf16.msra.mxu0 %v2491_v31 }
  0x2c   :  { %v3114_v28 = vld [vmem:[#allocation2 + $0x4e0] sm:$0xf]  ;;  %v3830_v29 = vld [vmem:[#allocation2 + $0x4ec] sm:$0xf0]  ;;  %v2875_v39 = vor.u32 %v3770_v27, %v2874_v26  ;;  %1657 = vmatpush.bf16.msra.mxu1 %v2619_v35 }
  0x2d   :  { %v3242_v30 = vld [vmem:[#allocation2 + $0x5e0] sm:$0xf]  ;;  %v3862_v32 = vld [vmem:[#allocation2 + $0x5ec] sm:$0xf0]  ;;  %v3115_v40 = vor.u32 %v3830_v29, %v3114_v28  ;;  %1670 = vmatpush.bf16.msra.mxu2 %v2747_v36 }
  0x2e   :  { %v3370_v33 = vld [vmem:[#allocation2 + $0x6e0] sm:$0xf]  ;;  %v3894_v34 = vld [vmem:[#allocation2 + $0x6ec] sm:$0xf0]  ;;  %v3243_v41 = vor.u32 %v3862_v32, %v3242_v30  ;;  %1683 = vmatpush.bf16.msra.mxu3 %v2875_v39 }
  0x2f   :  { %v3498_v37 = vld [vmem:[#allocation2 + $0x7e0] sm:$0xf]  ;;  %v3926_v38 = vld [vmem:[#allocation2 + $0x7ec] sm:$0xf0]  ;;  %v3371_v42 = vor.u32 %v3894_v34, %v3370_v33  ;;  %1689 = vmatpush.bf16.msrb.mxu0 %v3115_v40 }
  0x30   :  { %v3098_v43 = vld [vmem:[#allocation2 + $0x4c0] sm:$0xf]  ;;  %v3826_v44 = vld [vmem:[#allocation2 + $0x4cc] sm:$0xf0]  ;;  %v3499_v46 = vor.u32 %v3926_v38, %v3498_v37  ;;  %1702 = vmatpush.bf16.msrb.mxu1 %v3243_v41  ;;  %1671 = vmatmul.bf16.vlgmr.msra.gmra.mxu2 %v4118_v18 }
  0x31   :  { %v3226_v45 = vld [vmem:[#allocation2 + $0x5c0] sm:$0xf]  ;;  %v3858_v47 = vld [vmem:[#allocation2 + $0x5cc] sm:$0xf0]  ;;  %v3099_v52 = vor.u32 %v3826_v44, %v3098_v43  ;;  %1715 = vmatpush.bf16.msrb.mxu2 %v3371_v42  ;;  %1684 = vmatmul.bf16.vlgmr.msra.gmra.mxu3 %v4122_v20 }
  0x32   :  { %v3354_v48 = vld [vmem:[#allocation2 + $0x6c0] sm:$0xf]  ;;  %v3890_v49 = vld [vmem:[#allocation2 + $0x6cc] sm:$0xf0]  ;;  %v3227_v54 = vor.u32 %v3858_v47, %v3226_v45  ;;  %1728 = vmatpush.bf16.msrb.mxu3 %v3499_v46 }
  0x33   :  { %v3482_v50 = vld [vmem:[#allocation2 + $0x7c0] sm:$0xf]  ;;  %v3922_v51 = vld [vmem:[#allocation2 + $0x7cc] sm:$0xf0]  ;;  %v3355_v55 = vor.u32 %v3890_v49, %v3354_v48  ;;  %1690 = vmatpush.bf16.msrb.mxu0 %v3099_v52 }
  0x34   :  { %v3082_v53 = vld [vmem:[#allocation2 + $0x4a0] sm:$0xf]  ;;  %v3822_v56 = vld [vmem:[#allocation2 + $0x4ac] sm:$0xf0]  ;;  %v3483_v59 = vor.u32 %v3922_v51, %v3482_v50  ;;  %1703 = vmatpush.bf16.msrb.mxu1 %v3227_v54 }
  0x35   :  { %v3210_v57 = vld [vmem:[#allocation2 + $0x5a0] sm:$0xf]  ;;  %v3854_v58 = vld [vmem:[#allocation2 + $0x5ac] sm:$0xf0]  ;;  %v3083_v0 = vor.u32 %v3822_v56, %v3082_v53  ;;  %1716 = vmatpush.bf16.msrb.mxu2 %v3355_v55 }
  0x36   :  { %v3338_v60 = vld [vmem:[#allocation2 + $0x6a0] sm:$0xf]  ;;  %v3886_v61 = vld [vmem:[#allocation2 + $0x6ac] sm:$0xf0]  ;;  %v3211_v1 = vor.u32 %v3854_v58, %v3210_v57  ;;  %1729 = vmatpush.bf16.msrb.mxu3 %v3483_v59 }
  0x37   :  { %v3466_v62 = vld [vmem:[#allocation2 + $0x7a0] sm:$0xf]  ;;  %v3918_v63 = vld [vmem:[#allocation2 + $0x7ac] sm:$0xf0]  ;;  %v3339_v4 = vor.u32 %v3886_v61, %v3338_v60  ;;  %1691 = vmatpush.bf16.msrb.mxu0 %v3083_v0 }
  0x38   :  { %v59_v3 = vld [vmem:[%s4235_s0] sm:$0xff]  ;;  %v3818_v6 = vld [vmem:[#allocation2 + $0x48c] sm:$0xf0]  ;;  %v3467_v11 = vor.u32 %v3918_v63, %v3466_v62  ;;  %1704 = vmatpush.bf16.msrb.mxu1 %v3211_v1 }
  0x39   :  { %v3066_v5 = vld [vmem:[#allocation2 + $0x480] sm:$0xf]  ;;  %v333_v9 = vunpack.c.l.b16 %v59_v3  ;;  %v3850_v12 = vld [vmem:[#allocation2 + $0x58c] sm:$0xf0]  ;;  %v334_v15 = vunpack.c.h.b16 %v59_v3  ;;  %1717 = vmatpush.bf16.msrb.mxu2 %v3339_v4  ;;  %v62_v3 = vld [vmem:[%s4235_s0 + $0x18] sm:$0xff] }
  0x3a   :  { %v3194_v7 = vld [vmem:[#allocation2 + $0x580] sm:$0xf]  ;;  %v3882_v14 = vld [vmem:[#allocation2 + $0x68c] sm:$0xf0]  ;;  %v3067_v21 = vor.u32 %v3818_v6, %v3066_v5  ;;  %1730 = vmatpush.bf16.msrb.mxu3 %v3467_v11 }
  0x3b   :  { %v3322_v13 = vld [vmem:[#allocation2 + $0x680] sm:$0xf]  ;;  %v3914_v17 = vld [vmem:[#allocation2 + $0x78c] sm:$0xf0]  ;;  %v4120_v19 = vpack.c.b16 %v333_v9, %v333_v9  ;;  %v4124_v22 = vpack.c.b16 %v334_v15, %v334_v15  ;;  %v3195_v23 = vor.u32 %v3850_v12, %v3194_v7  ;;  %v2604_v9 = vld [vmem:[#allocation2 + $0xf0] sm:$0xf0]  ;;  %v339_v15 = vunpack.c.l.b16 %v62_v3 }
  0x3c   :  { %v3450_v16 = vld [vmem:[#allocation2 + $0x780] sm:$0xf]  ;;  %v3323_v24 = vor.u32 %v3882_v14, %v3322_v13  ;;  %v3814_v26 = vld [vmem:[#allocation2 + $0x46c] sm:$0xf0]  ;;  %1692 = vmatpush.bf16.msrb.mxu0 %v3067_v21  ;;  %v2732_v12 = vld [vmem:[#allocation2 + $0x1f0] sm:$0xf0] }
  0x3d   :  { %v3050_v25 = vld [vmem:[#allocation2 + $0x460] sm:$0xf]  ;;  %v3451_v28 = vor.u32 %v3914_v17, %v3450_v16  ;;  %v3846_v29 = vld [vmem:[#allocation2 + $0x56c] sm:$0xf0]  ;;  %1645 = vmatmul.bf16.vlgmr.msra.gmra.mxu0 %v4120_v19  ;;  %1658 = vmatmul.bf16.vlgmr.msra.gmra.mxu1 %v4124_v22  ;;  %v3764_v13 = vld [vmem:[#allocation2 + $0x2e4] sm:$0xf] }
  0x3e   :  { %v3178_v27 = vld [vmem:[#allocation2 + $0x560] sm:$0xf]  ;;  %v3878_v31 = vld [vmem:[#allocation2 + $0x66c] sm:$0xf0]  ;;  %v3051_v34 = vor.u32 %v3814_v26, %v3050_v25  ;;  %1705 = vmatpush.bf16.msrb.mxu1 %v3195_v23  ;;  %1718 = vmatpush.bf16.msrb.mxu2 %v3323_v24  ;;  %v2860_v14 = vld [vmem:[#allocation2 + $0x2f0] sm:$0xf0]  ;;  %v340_v25 = vunpack.c.h.b16 %v62_v3 }
  0x3f   :  { %v3306_v30 = vld [vmem:[#allocation2 + $0x660] sm:$0xf]  ;;  %v3910_v33 = vld [vmem:[#allocation2 + $0x76c] sm:$0xf0]  ;;  %v3179_v35 = vor.u32 %v3846_v29, %v3178_v27  ;;  %1731 = vmatpush.bf16.msrb.mxu3 %v3451_v28  ;;  %v3796_v21 = vld [vmem:[#allocation2 + $0x3e4] sm:$0xf]  ;;  %v2607_v27 = vor.u32 %v3700_v8, %v2604_v9  ;;  %v2735_v29 = vor.u32 %v3732_v10, %v2732_v12 }
  0x40   :  { %v3434_v32 = vld [vmem:[#allocation2 + $0x760] sm:$0xf]  ;;  %v3307_v36 = vor.u32 %v3878_v31, %v3306_v30  ;;  %v3810_v38 = vld [vmem:[#allocation2 + $0x44c] sm:$0xf0]  ;;  %1693 = vmatpush.bf16.msrb.mxu0 %v3051_v34  ;;  %v2988_v23 = vld [vmem:[#allocation2 + $0x3f0] sm:$0xf0]  ;;  %v2863_v30 = vor.u32 %v3764_v13, %v2860_v14 }
  0x41   :  { %v3034_v37 = vld [vmem:[#allocation2 + $0x440] sm:$0xf]  ;;  %v3435_v40 = vor.u32 %v3910_v33, %v3434_v32  ;;  %v3842_v41 = vld [vmem:[#allocation2 + $0x54c] sm:$0xf0]  ;;  %v3696_v31 = vld [vmem:[#allocation2 + $0xc4] sm:$0xf]  ;;  %v2991_v34 = vor.u32 %v3796_v21, %v2988_v23 }
  0x42   :  { %v3162_v39 = vld [vmem:[#allocation2 + $0x540] sm:$0xf]  ;;  %v3874_v43 = vld [vmem:[#allocation2 + $0x64c] sm:$0xf0]  ;;  %v3035_v46 = vor.u32 %v3810_v38, %v3034_v37  ;;  %1706 = vmatpush.bf16.msrb.mxu1 %v3179_v35  ;;  %1719 = vmatpush.bf16.msrb.mxu2 %v3307_v36  ;;  %v2588_v32 = vld [vmem:[#allocation2 + $0xd0] sm:$0xf0]  ;;  %v4136_v38 = vpack.c.b16 %v339_v15, %v339_v15 }
  0x43   :  { %v3290_v42 = vld [vmem:[#allocation2 + $0x640] sm:$0xf]  ;;  %v3906_v45 = vld [vmem:[#allocation2 + $0x74c] sm:$0xf0]  ;;  %v3163_v47 = vor.u32 %v3842_v41, %v3162_v39  ;;  %1732 = vmatpush.bf16.msrb.mxu3 %v3435_v40  ;;  %v3728_v33 = vld [vmem:[#allocation2 + $0x1c4] sm:$0xf] }
  0x44   :  { %v3418_v44 = vld [vmem:[#allocation2 + $0x740] sm:$0xf]  ;;  %v3291_v48 = vor.u32 %v3874_v43, %v3290_v42  ;;  %v3806_v50 = vld [vmem:[#allocation2 + $0x42c] sm:$0xf0]  ;;  %1694 = vmatpush.bf16.msrb.mxu0 %v3035_v46  ;;  %v2716_v35 = vld [vmem:[#allocation2 + $0x1d0] sm:$0xf0]  ;;  %v4140_v42 = vpack.c.b16 %v340_v25, %v340_v25  ;;  %v2591_v43 = vor.u32 %v3696_v31, %v2588_v32 }
  0x45   :  { %v3018_v49 = vld [vmem:[#allocation2 + $0x420] sm:$0xf]  ;;  %v3419_v52 = vor.u32 %v3906_v45, %v3418_v44  ;;  %v3838_v53 = vld [vmem:[#allocation2 + $0x52c] sm:$0xf0]  ;;  %v3760_v36 = vld [vmem:[#allocation2 + $0x2c4] sm:$0xf]  ;;  %v2719_v45 = vor.u32 %v3728_v33, %v2716_v35 }
  0x46   :  { %v3146_v51 = vld [vmem:[#allocation2 + $0x520] sm:$0xf]  ;;  %v3870_v55 = vld [vmem:[#allocation2 + $0x62c] sm:$0xf0]  ;;  %v3019_v59 = vor.u32 %v3806_v50, %v3018_v49  ;;  %1707 = vmatpush.bf16.msrb.mxu1 %v3163_v47  ;;  %1720 = vmatpush.bf16.msrb.mxu2 %v3291_v48  ;;  %v2844_v37 = vld [vmem:[#allocation2 + $0x2d0] sm:$0xf0] }
  0x47   :  { %v3274_v54 = vld [vmem:[#allocation2 + $0x620] sm:$0xf]  ;;  %v3902_v57 = vld [vmem:[#allocation2 + $0x72c] sm:$0xf0]  ;;  %v3147_v63 = vor.u32 %v3838_v53, %v3146_v51  ;;  %1733 = vmatpush.bf16.msrb.mxu3 %v3419_v52  ;;  %v3792_v39 = vld [vmem:[#allocation2 + $0x3c4] sm:$0xf]  ;;  %v2847_v46 = vor.u32 %v3760_v36, %v2844_v37 }
  0x48   :  { %v3402_v56 = vld [vmem:[#allocation2 + $0x720] sm:$0xf]  ;;  %v3802_v60 = vld [vmem:[#allocation2 + $0x40c] sm:$0xf0]  ;;  %v3275_v0 = vor.u32 %v3870_v55, %v3274_v54  ;;  %1695 = vmatpush.bf16.msrb.mxu0 %v3019_v59  ;;  %v2972_v40 = vld [vmem:[#allocation2 + $0x3d0] sm:$0xf0] }
  0x49   :  { %v3002_v58 = vld [vmem:[#allocation2 + $0x400] sm:$0xf]  ;;  %v3834_v62 = vld [vmem:[#allocation2 + $0x50c] sm:$0xf0]  ;;  %v3403_v4 = vor.u32 %v3902_v57, %v3402_v56  ;;  %v3692_v47 = vld [vmem:[#allocation2 + $0xa4] sm:$0xf]  ;;  %v2975_v50 = vor.u32 %v3792_v39, %v2972_v40 }
  0x4a   :  { %v3130_v61 = vld [vmem:[#allocation2 + $0x500] sm:$0xf]  ;;  %v3866_v2 = vld [vmem:[#allocation2 + $0x60c] sm:$0xf0]  ;;  %v3003_v11 = vor.u32 %v3802_v60, %v3002_v58  ;;  %1708 = vmatpush.bf16.msrb.mxu1 %v3147_v63  ;;  %1721 = vmatpush.bf16.msrb.mxu2 %v3275_v0  ;;  %v2572_v48 = vld [vmem:[#allocation2 + $0xb0] sm:$0xf0] }
  0x4b   :  { %v3258_v1 = vld [vmem:[#allocation2 + $0x600] sm:$0xf]  ;;  %v3898_v6 = vld [vmem:[#allocation2 + $0x70c] sm:$0xf0]  ;;  %v3131_v16 = vor.u32 %v3834_v62, %v3130_v61  ;;  %1734 = vmatpush.bf16.msrb.mxu3 %v3403_v4  ;;  %v3724_v49 = vld [vmem:[#allocation2 + $0x1a4] sm:$0xf]  ;;  %v2575_v56 = vor.u32 %v3692_v47, %v2572_v48 }
  0x4c   :  { %v3386_v5 = vld [vmem:[#allocation2 + $0x700] sm:$0xf]  ;;  %v61_v7 = vld [vmem:[%s4235_s0 + $0x10] sm:$0xff]  ;;  %v3259_v17 = vor.u32 %v3866_v2, %v3258_v1  ;;  %1696 = vmatpush.bf16.msrb.mxu0 %v3003_v11  ;;  %v3756_v52 = vld [vmem:[#allocation2 + $0x2a4] sm:$0xf] }
  0x4d   :  { %v337_v24 = vunpack.c.l.b16 %v61_v7  ;;  %v3387_v26 = vor.u32 %v3898_v6, %v3386_v5  ;;  %v338_v28 = vunpack.c.h.b16 %v61_v7  ;;  %v2700_v51 = vld [vmem:[#allocation2 + $0x1b0] sm:$0xf0]  ;;  %v3788_v54 = vld [vmem:[#allocation2 + $0x3a4] sm:$0xf] }
  0x4e   :  { %1709 = vmatpush.bf16.msrb.mxu1 %v3131_v16  ;;  %1722 = vmatpush.bf16.msrb.mxu2 %v3259_v17  ;;  %v2828_v53 = vld [vmem:[#allocation2 + $0x2b0] sm:$0xf0]  ;;  %v2703_v57 = vor.u32 %v3724_v49, %v2700_v51  ;;  %v3688_v59 = vld [vmem:[#allocation2 + $0x84] sm:$0xf] }
  0x4f   :  { %v4138_v41 = vpack.c.b16 %v337_v24, %v337_v24  ;;  %1735 = vmatpush.bf16.msrb.mxu3 %v3387_v26  ;;  %v4142_v44 = vpack.c.b16 %v338_v28, %v338_v28  ;;  %v2956_v55 = vld [vmem:[#allocation2 + $0x3b0] sm:$0xf0]  ;;  %v2831_v58 = vor.u32 %v3756_v52, %v2828_v53  ;;  %v3720_v61 = vld [vmem:[#allocation2 + $0x184] sm:$0xf] }
  0x50   :  { %1741 = vmatpush.bf16.msra.mxu0 %v2607_v27  ;;  %v2556_v60 = vld [vmem:[#allocation2 + $0x90] sm:$0xf0]  ;;  %v2959_v62 = vor.u32 %v3788_v54, %v2956_v55  ;;  %v3752_v0 = vld [vmem:[#allocation2 + $0x284] sm:$0xf] }
  0x51   :  { %1723 = vmatmul.bf16.vlgmr.msrb.gmra.mxu2 %v4136_v38  ;;  %1697 = vmatmul.bf16.vlgmr.msrb.gmra.mxu0 %v4138_v41  ;;  %v2684_v63 = vld [vmem:[#allocation2 + $0x190] sm:$0xf0]  ;;  %v3784_v2 = vld [vmem:[#allocation2 + $0x384] sm:$0xf]  ;;  %v2559_v4 = vor.u32 %v3688_v59, %v2556_v60 }
  0x52   :  { %1754 = vmatpush.bf16.msra.mxu1 %v2735_v29  ;;  %1767 = vmatpush.bf16.msra.mxu2 %v2863_v30  ;;  %v2812_v1 = vld [vmem:[#allocation2 + $0x290] sm:$0xf0]  ;;  %v2687_v5 = vor.u32 %v3720_v61, %v2684_v63  ;;  %v3684_v7 = vld [vmem:[#allocation2 + $0x64] sm:$0xf] }
  0x53   :  { %1780 = vmatpush.bf16.msra.mxu3 %v2991_v34  ;;  %1710 = vmatmul.bf16.vlgmr.msrb.gmra.mxu1 %v4142_v44  ;;  %v2940_v3 = vld [vmem:[#allocation2 + $0x390] sm:$0xf0]  ;;  %v2815_v6 = vor.u32 %v3752_v0, %v2812_v1  ;;  %v3716_v9 = vld [vmem:[#allocation2 + $0x164] sm:$0xf] }
  0x54   :  { %1736 = vmatmul.bf16.vlgmr.msrb.gmra.mxu3 %v4140_v42  ;;  %1742 = vmatpush.bf16.msra.mxu0 %v2591_v43  ;;  %v2540_v8 = vld [vmem:[#allocation2 + $0x70] sm:$0xf0]  ;;  %v2943_v10 = vor.u32 %v3784_v2, %v2940_v3  ;;  %v3748_v12 = vld [vmem:[#allocation2 + $0x264] sm:$0xf] }
  0x55   :  { %v2668_v11 = vld [vmem:[#allocation2 + $0x170] sm:$0xf0]  ;;  %v3780_v14 = vld [vmem:[#allocation2 + $0x364] sm:$0xf]  ;;  %v2543_v16 = vor.u32 %v3684_v7, %v2540_v8 }
  0x56   :  { %1755 = vmatpush.bf16.msra.mxu1 %v2719_v45  ;;  %1768 = vmatpush.bf16.msra.mxu2 %v2847_v46  ;;  %v2796_v13 = vld [vmem:[#allocation2 + $0x270] sm:$0xf0]  ;;  %v2671_v17 = vor.u32 %v3716_v9, %v2668_v11  ;;  %v3680_v23 = vld [vmem:[#allocation2 + $0x44] sm:$0xf] }
  0x57   :  { %1781 = vmatpush.bf16.msra.mxu3 %v2975_v50  ;;  %v2924_v15 = vld [vmem:[#allocation2 + $0x370] sm:$0xf0]  ;;  %v2799_v21 = vor.u32 %v3748_v12, %v2796_v13  ;;  %v3712_v25 = vld [vmem:[#allocation2 + $0x144] sm:$0xf] }
  0x58   :  { %1743 = vmatpush.bf16.msra.mxu0 %v2575_v56  ;;  %v2524_v24 = vld [vmem:[#allocation2 + $0x50] sm:$0xf0]  ;;  %v2927_v26 = vor.u32 %v3780_v14, %v2924_v15  ;;  %v3744_v28 = vld [vmem:[#allocation2 + $0x244] sm:$0xf] }
  0x59   :  { %v2652_v27 = vld [vmem:[#allocation2 + $0x150] sm:$0xf0]  ;;  %v3776_v30 = vld [vmem:[#allocation2 + $0x344] sm:$0xf]  ;;  %v2527_v32 = vor.u32 %v3680_v23, %v2524_v24 }
  0x5a   :  { %1756 = vmatpush.bf16.msra.mxu1 %v2703_v57  ;;  %1769 = vmatpush.bf16.msra.mxu2 %v2831_v58  ;;  %v2780_v29 = vld [vmem:[#allocation2 + $0x250] sm:$0xf0]  ;;  %v2655_v33 = vor.u32 %v3712_v25, %v2652_v27  ;;  %v3676_v35 = vld [vmem:[#allocation2 + $0x24] sm:$0xf] }
  0x5b   :  { %1782 = vmatpush.bf16.msra.mxu3 %v2959_v62  ;;  %v2908_v31 = vld [vmem:[#allocation2 + $0x350] sm:$0xf0]  ;;  %v2783_v34 = vor.u32 %v3744_v28, %v2780_v29  ;;  %v3708_v37 = vld [vmem:[#allocation2 + $0x124] sm:$0xf] }
  0x5c   :  { %1744 = vmatpush.bf16.msra.mxu0 %v2559_v4  ;;  %v2508_v36 = vld [vmem:[#allocation2 + $0x30] sm:$0xf0]  ;;  %v2911_v39 = vor.u32 %v3776_v30, %v2908_v31  ;;  %v3740_v43 = vld [vmem:[#allocation2 + $0x224] sm:$0xf] }
  0x5d   :  { %v2636_v40 = vld [vmem:[#allocation2 + $0x130] sm:$0xf0]  ;;  %v3772_v46 = vld [vmem:[#allocation2 + $0x324] sm:$0xf]  ;;  %v2511_v48 = vor.u32 %v3676_v35, %v2508_v36 }
  0x5e   :  { %1757 = vmatpush.bf16.msra.mxu1 %v2687_v5  ;;  %1770 = vmatpush.bf16.msra.mxu2 %v2815_v6  ;;  %v2764_v45 = vld [vmem:[#allocation2 + $0x230] sm:$0xf0]  ;;  %v3672_v49 = vld [vmem:[#allocation2 + $0x4] sm:$0xf]  ;;  %v2639_v51 = vor.u32 %v3708_v37, %v2636_v40 }
  0x5f   :  { %1783 = vmatpush.bf16.msra.mxu3 %v2943_v10  ;;  %v2892_v47 = vld [vmem:[#allocation2 + $0x330] sm:$0xf0]  ;;  %v2767_v52 = vor.u32 %v3740_v43, %v2764_v45  ;;  %v3704_v53 = vld [vmem:[#allocation2 + $0x104] sm:$0xf] }
  0x60   :  { %1745 = vmatpush.bf16.msra.mxu0 %v2543_v16  ;;  %v2492_v50 = vld [vmem:[#allocation2 + $0x10] sm:$0xf0]  ;;  %v3736_v55 = vld [vmem:[#allocation2 + $0x204] sm:$0xf]  ;;  %v2895_v56 = vor.u32 %v3772_v46, %v2892_v47 }
  0x61   :  { %v2620_v54 = vld [vmem:[#allocation2 + $0x110] sm:$0xf0]  ;;  %v3768_v58 = vld [vmem:[#allocation2 + $0x304] sm:$0xf]  ;;  %v2495_v63 = vor.u32 %v3672_v49, %v2492_v50 }
  0x62   :  { %1758 = vmatpush.bf16.msra.mxu1 %v2671_v17  ;;  %1771 = vmatpush.bf16.msra.mxu2 %v2799_v21  ;;  %v2748_v57 = vld [vmem:[#allocation2 + $0x210] sm:$0xf0]  ;;  %v3828_v60 = vld [vmem:[#allocation2 + $0x4e4] sm:$0xf]  ;;  %v2623_v3 = vor.u32 %v3704_v53, %v2620_v54 }
  0x63   :  { %1784 = vmatpush.bf16.msra.mxu3 %v2927_v26  ;;  %v2876_v59 = vld [vmem:[#allocation2 + $0x310] sm:$0xf0]  ;;  %v3860_v62 = vld [vmem:[#allocation2 + $0x5e4] sm:$0xf]  ;;  %v2751_v4 = vor.u32 %v3736_v55, %v2748_v57 }
  0x64   :  { %1746 = vmatpush.bf16.msra.mxu0 %v2527_v32  ;;  %v3116_v61 = vld [vmem:[#allocation2 + $0x4f0] sm:$0xf0]  ;;  %v3892_v1 = vld [vmem:[#allocation2 + $0x6e4] sm:$0xf]  ;;  %v2879_v7 = vor.u32 %v3768_v58, %v2876_v59 }
  0x65   :  { %v3244_v0 = vld [vmem:[#allocation2 + $0x5f0] sm:$0xf0]  ;;  %v3924_v5 = vld [vmem:[#allocation2 + $0x7e4] sm:$0xf]  ;;  %v3119_v8 = vor.u32 %v3828_v60, %v3116_v61 }
  0x66   :  { %1759 = vmatpush.bf16.msra.mxu1 %v2655_v33  ;;  %1772 = vmatpush.bf16.msra.mxu2 %v2783_v34  ;;  %v3372_v2 = vld [vmem:[#allocation2 + $0x6f0] sm:$0xf0]  ;;  %v3247_v9 = vor.u32 %v3860_v62, %v3244_v0  ;;  %v3824_v11 = vld [vmem:[#allocation2 + $0x4c4] sm:$0xf] }
  0x67   :  { %1785 = vmatpush.bf16.msra.mxu3 %v2911_v39  ;;  %v3500_v6 = vld [vmem:[#allocation2 + $0x7f0] sm:$0xf0]  ;;  %v3375_v10 = vor.u32 %v3892_v1, %v3372_v2  ;;  %v3856_v13 = vld [vmem:[#allocation2 + $0x5c4] sm:$0xf] }
  0x68   :  { %1747 = vmatpush.bf16.msra.mxu0 %v2511_v48  ;;  %v3100_v12 = vld [vmem:[#allocation2 + $0x4d0] sm:$0xf0]  ;;  %v3503_v14 = vor.u32 %v3924_v5, %v3500_v6  ;;  %v3888_v16 = vld [vmem:[#allocation2 + $0x6c4] sm:$0xf] }
  0x69   :  { %v3228_v15 = vld [vmem:[#allocation2 + $0x5d0] sm:$0xf0]  ;;  %v3920_v21 = vld [vmem:[#allocation2 + $0x7c4] sm:$0xf]  ;;  %v3103_v24 = vor.u32 %v3824_v11, %v3100_v12 }
  0x6a   :  { %1760 = vmatpush.bf16.msra.mxu1 %v2639_v51  ;;  %1773 = vmatpush.bf16.msra.mxu2 %v2767_v52  ;;  %v3356_v17 = vld [vmem:[#allocation2 + $0x6d0] sm:$0xf0]  ;;  %v3231_v25 = vor.u32 %v3856_v13, %v3228_v15  ;;  %v3820_v27 = vld [vmem:[#allocation2 + $0x4a4] sm:$0xf] }
  0x6b   :  { %1786 = vmatpush.bf16.msra.mxu3 %v2895_v56  ;;  %v3484_v23 = vld [vmem:[#allocation2 + $0x7d0] sm:$0xf0]  ;;  %v3359_v26 = vor.u32 %v3888_v16, %v3356_v17  ;;  %v3852_v29 = vld [vmem:[#allocation2 + $0x5a4] sm:$0xf] }
  0x6c   :  { %1748 = vmatpush.bf16.msra.mxu0 %v2495_v63  ;;  %v3084_v28 = vld [vmem:[#allocation2 + $0x4b0] sm:$0xf0]  ;;  %v3487_v30 = vor.u32 %v3920_v21, %v3484_v23  ;;  %v3884_v32 = vld [vmem:[#allocation2 + $0x6a4] sm:$0xf] }
  0x6d   :  { %v3212_v31 = vld [vmem:[#allocation2 + $0x5b0] sm:$0xf0]  ;;  %v3916_v34 = vld [vmem:[#allocation2 + $0x7a4] sm:$0xf]  ;;  %v3087_v36 = vor.u32 %v3820_v27, %v3084_v28 }
  0x6e   :  { %1761 = vmatpush.bf16.msra.mxu1 %v2623_v3  ;;  %1774 = vmatpush.bf16.msra.mxu2 %v2751_v4  ;;  %v3340_v33 = vld [vmem:[#allocation2 + $0x6b0] sm:$0xf0]  ;;  %v3215_v37 = vor.u32 %v3852_v29, %v3212_v31  ;;  %v3816_v40 = vld [vmem:[#allocation2 + $0x484] sm:$0xf] }
  0x6f   :  { %1787 = vmatpush.bf16.msra.mxu3 %v2879_v7  ;;  %v3468_v35 = vld [vmem:[#allocation2 + $0x7b0] sm:$0xf0]  ;;  %1749 = vmatmul.bf16.vlgmr.msra.gmra.mxu0 %v4120_v19  ;;  %v3343_v39 = vor.u32 %v3884_v32, %v3340_v33  ;;  %v3848_v45 = vld [vmem:[#allocation2 + $0x584] sm:$0xf] }
  0x70   :  { %1793 = vmatpush.bf16.msrb.mxu0 %v3119_v8  ;;  %v3068_v43 = vld [vmem:[#allocation2 + $0x490] sm:$0xf0]  ;;  %v3471_v46 = vor.u32 %v3916_v34, %v3468_v35  ;;  %v3880_v48 = vld [vmem:[#allocation2 + $0x684] sm:$0xf] }
  0x71   :  { %1775 = vmatmul.bf16.vlgmr.msra.gmra.mxu2 %v4118_v18  ;;  %1762 = vmatmul.bf16.vlgmr.msra.gmra.mxu1 %v4124_v22  ;;  %v3196_v47 = vld [vmem:[#allocation2 + $0x590] sm:$0xf0]  ;;  %v3912_v50 = vld [vmem:[#allocation2 + $0x784] sm:$0xf]  ;;  %v3071_v52 = vor.u32 %v3816_v40, %v3068_v43  ;;  %v2610_v43 = vld [vmem:[#allocation2 + $0xe8] sm:$0xf] }
  0x72   :  { %1806 = vmatpush.bf16.msrb.mxu1 %v3247_v9  ;;  %1819 = vmatpush.bf16.msrb.mxu2 %v3375_v10  ;;  %v3324_v49 = vld [vmem:[#allocation2 + $0x690] sm:$0xf0]  ;;  %v3199_v53 = vor.u32 %v3848_v45, %v3196_v47  ;;  %v3812_v55 = vld [vmem:[#allocation2 + $0x464] sm:$0xf]  ;;  %v3703_v45 = vld [vmem:[#allocation2 + $0xf4] sm:$0xf0] }
  0x73   :  { %1832 = vmatpush.bf16.msrb.mxu3 %v3503_v14  ;;  %v3452_v51 = vld [vmem:[#allocation2 + $0x790] sm:$0xf0]  ;;  %v3327_v54 = vor.u32 %v3880_v48, %v3324_v49  ;;  %v3844_v57 = vld [vmem:[#allocation2 + $0x564] sm:$0xf]  ;;  %v3735_v48 = vld [vmem:[#allocation2 + $0x1f4] sm:$0xf0] }
  0x74   :  { %1788 = vmatmul.bf16.vlgmr.msra.gmra.mxu3 %v4122_v20  ;;  %1794 = vmatpush.bf16.msrb.mxu0 %v3103_v24  ;;  %v3052_v56 = vld [vmem:[#allocation2 + $0x470] sm:$0xf0]  ;;  %v3455_v58 = vor.u32 %v3912_v50, %v3452_v51  ;;  %v3876_v60 = vld [vmem:[#allocation2 + $0x664] sm:$0xf]  ;;  %v2866_v49 = vld [vmem:[#allocation2 + $0x2e8] sm:$0xf] }
  0x75   :  { %v3180_v59 = vld [vmem:[#allocation2 + $0x570] sm:$0xf0]  ;;  %v3908_v62 = vld [vmem:[#allocation2 + $0x764] sm:$0xf]  ;;  %v3055_v0 = vor.u32 %v3812_v55, %v3052_v56  ;;  %v3767_v50 = vld [vmem:[#allocation2 + $0x2f4] sm:$0xf0]  ;;  %v2611_v56 = vor.u32 %v3703_v45, %v2610_v43 }
  0x76   :  { %1807 = vmatpush.bf16.msrb.mxu1 %v3231_v25  ;;  %1820 = vmatpush.bf16.msrb.mxu2 %v3359_v26  ;;  %v3308_v61 = vld [vmem:[#allocation2 + $0x670] sm:$0xf0]  ;;  %v3183_v1 = vor.u32 %v3844_v57, %v3180_v59  ;;  %v3808_v3 = vld [vmem:[#allocation2 + $0x444] sm:$0xf]  ;;  %v2594_v59 = vld [vmem:[#allocation2 + $0xc8] sm:$0xf] }
  0x77   :  { %1833 = vmatpush.bf16.msrb.mxu3 %v3487_v30  ;;  %v3436_v63 = vld [vmem:[#allocation2 + $0x770] sm:$0xf0]  ;;  %v3311_v2 = vor.u32 %v3876_v60, %v3308_v61  ;;  %v3840_v5 = vld [vmem:[#allocation2 + $0x544] sm:$0xf]  ;;  %v3699_v60 = vld [vmem:[#allocation2 + $0xd4] sm:$0xf0] }
  0x78   :  { %1795 = vmatpush.bf16.msrb.mxu0 %v3087_v36  ;;  %v3036_v4 = vld [vmem:[#allocation2 + $0x450] sm:$0xf0]  ;;  %v3439_v6 = vor.u32 %v3908_v62, %v3436_v63  ;;  %v3872_v8 = vld [vmem:[#allocation2 + $0x644] sm:$0xf]  ;;  %v2722_v61 = vld [vmem:[#allocation2 + $0x1c8] sm:$0xf] }
  0x79   :  { %v3164_v7 = vld [vmem:[#allocation2 + $0x550] sm:$0xf0]  ;;  %v3904_v10 = vld [vmem:[#allocation2 + $0x744] sm:$0xf]  ;;  %v3039_v12 = vor.u32 %v3808_v3, %v3036_v4  ;;  %v3731_v63 = vld [vmem:[#allocation2 + $0x1d4] sm:$0xf0]  ;;  %v2595_v4 = vor.u32 %v3699_v60, %v2594_v59 }
  0x7a   :  { %1808 = vmatpush.bf16.msrb.mxu1 %v3215_v37  ;;  %1821 = vmatpush.bf16.msrb.mxu2 %v3343_v39  ;;  %v3292_v9 = vld [vmem:[#allocation2 + $0x650] sm:$0xf0]  ;;  %v3167_v13 = vor.u32 %v3840_v5, %v3164_v7  ;;  %v3804_v15 = vld [vmem:[#allocation2 + $0x424] sm:$0xf]  ;;  %v3795_v3 = vld [vmem:[#allocation2 + $0x3d4] sm:$0xf0]  ;;  %v2723_v5 = vor.u32 %v3731_v63, %v2722_v61 }
  0x7b   :  { %1834 = vmatpush.bf16.msrb.mxu3 %v3471_v46  ;;  %v3420_v11 = vld [vmem:[#allocation2 + $0x750] sm:$0xf0]  ;;  %v3295_v14 = vor.u32 %v3872_v8, %v3292_v9  ;;  %v3836_v17 = vld [vmem:[#allocation2 + $0x524] sm:$0xf]  ;;  %v2738_v46 = vld [vmem:[#allocation2 + $0x1e8] sm:$0xf] }
  0x7c   :  { %1796 = vmatpush.bf16.msrb.mxu0 %v3071_v52  ;;  %v3020_v16 = vld [vmem:[#allocation2 + $0x430] sm:$0xf0]  ;;  %v3423_v21 = vor.u32 %v3904_v10, %v3420_v11  ;;  %v3868_v24 = vld [vmem:[#allocation2 + $0x624] sm:$0xf]  ;;  %v2739_v57 = vor.u32 %v3735_v48, %v2738_v46  ;;  %v2578_v7 = vld [vmem:[#allocation2 + $0xa8] sm:$0xf] }
  0x7d   :  { %v3148_v23 = vld [vmem:[#allocation2 + $0x530] sm:$0xf0]  ;;  %v3900_v26 = vld [vmem:[#allocation2 + $0x724] sm:$0xf]  ;;  %v3023_v28 = vor.u32 %v3804_v15, %v3020_v16  ;;  %v3695_v8 = vld [vmem:[#allocation2 + $0xb4] sm:$0xf0] }
  0x7e   :  { %1809 = vmatpush.bf16.msrb.mxu1 %v3199_v53  ;;  %1822 = vmatpush.bf16.msrb.mxu2 %v3327_v54  ;;  %v3276_v25 = vld [vmem:[#allocation2 + $0x630] sm:$0xf0]  ;;  %v3800_v29 = vld [vmem:[#allocation2 + $0x404] sm:$0xf]  ;;  %v3151_v31 = vor.u32 %v3836_v17, %v3148_v23  ;;  %v2994_v53 = vld [vmem:[#allocation2 + $0x3e8] sm:$0xf]  ;;  %v2579_v16 = vor.u32 %v3695_v8, %v2578_v7 }
  0x7f   :  { %1835 = vmatpush.bf16.msrb.mxu3 %v3455_v58  ;;  %v3404_v27 = vld [vmem:[#allocation2 + $0x730] sm:$0xf0]  ;;  %v3279_v32 = vor.u32 %v3868_v24, %v3276_v25  ;;  %v3832_v33 = vld [vmem:[#allocation2 + $0x504] sm:$0xf]  ;;  %v3799_v54 = vld [vmem:[#allocation2 + $0x3f4] sm:$0xf0]  ;;  %v2867_v58 = vor.u32 %v3767_v50, %v2866_v49 }
  0x80   :  { %1797 = vmatpush.bf16.msrb.mxu0 %v3055_v0  ;;  %v3004_v30 = vld [vmem:[#allocation2 + $0x410] sm:$0xf0]  ;;  %v3864_v35 = vld [vmem:[#allocation2 + $0x604] sm:$0xf]  ;;  %v3407_v36 = vor.u32 %v3900_v26, %v3404_v27  ;;  %v2995_v62 = vor.u32 %v3799_v54, %v2994_v53  ;;  %v2850_v0 = vld [vmem:[#allocation2 + $0x2c8] sm:$0xf] }
  0x81   :  { %v3132_v34 = vld [vmem:[#allocation2 + $0x510] sm:$0xf0]  ;;  %v3896_v39 = vld [vmem:[#allocation2 + $0x704] sm:$0xf]  ;;  %v3007_v47 = vor.u32 %v3800_v29, %v3004_v30  ;;  %v2706_v9 = vld [vmem:[#allocation2 + $0x1a8] sm:$0xf] }
  0x82   :  { %1810 = vmatpush.bf16.msrb.mxu1 %v3183_v1  ;;  %1823 = vmatpush.bf16.msrb.mxu2 %v3311_v2  ;;  %v3260_v37 = vld [vmem:[#allocation2 + $0x610] sm:$0xf0]  ;;  %v3135_v51 = vor.u32 %v3832_v33, %v3132_v34  ;;  %v3763_v1 = vld [vmem:[#allocation2 + $0x2d4] sm:$0xf0]  ;;  %v2978_v2 = vld [vmem:[#allocation2 + $0x3c8] sm:$0xf] }
  0x83   :  { %1836 = vmatpush.bf16.msrb.mxu3 %v3439_v6  ;;  %v3388_v40 = vld [vmem:[#allocation2 + $0x710] sm:$0xf0]  ;;  %v3263_v52 = vor.u32 %v3864_v35, %v3260_v37  ;;  %v2851_v6 = vor.u32 %v3763_v1, %v2850_v0  ;;  %v2979_v10 = vor.u32 %v3795_v3, %v2978_v2  ;;  %v3727_v11 = vld [vmem:[#allocation2 + $0x1b4] sm:$0xf0]  ;;  %v2562_v23 = vld [vmem:[#allocation2 + $0x88] sm:$0xf] }
  0x84   :  { %1798 = vmatpush.bf16.msrb.mxu0 %v3039_v12  ;;  %v3391_v55 = vor.u32 %v3896_v39, %v3388_v40  ;;  %v2834_v12 = vld [vmem:[#allocation2 + $0x2a8] sm:$0xf]  ;;  %v3791_v15 = vld [vmem:[#allocation2 + $0x3b4] sm:$0xf0]  ;;  %v2707_v17 = vor.u32 %v3727_v11, %v2706_v9 }
  0x85   :  { %v3691_v24 = vld [vmem:[#allocation2 + $0x94] sm:$0xf0]  ;;  %v2690_v25 = vld [vmem:[#allocation2 + $0x188] sm:$0xf] }
  0x86   :  { %1811 = vmatpush.bf16.msrb.mxu1 %v3167_v13  ;;  %1824 = vmatpush.bf16.msrb.mxu2 %v3295_v14  ;;  %v3759_v13 = vld [vmem:[#allocation2 + $0x2b4] sm:$0xf0]  ;;  %v2962_v14 = vld [vmem:[#allocation2 + $0x3a8] sm:$0xf] }
  0x87   :  { %1837 = vmatpush.bf16.msrb.mxu3 %v3423_v21  ;;  %v2835_v21 = vor.u32 %v3759_v13, %v2834_v12  ;;  %v2963_v26 = vor.u32 %v3791_v15, %v2962_v14  ;;  %v3723_v27 = vld [vmem:[#allocation2 + $0x194] sm:$0xf0]  ;;  %v2946_v30 = vld [vmem:[#allocation2 + $0x388] sm:$0xf] }
  0x88   :  { %1799 = vmatpush.bf16.msrb.mxu0 %v3023_v28  ;;  %v2818_v28 = vld [vmem:[#allocation2 + $0x288] sm:$0xf]  ;;  %v3755_v29 = vld [vmem:[#allocation2 + $0x294] sm:$0xf0]  ;;  %v2691_v33 = vor.u32 %v3723_v27, %v2690_v25 }
  0x89   :  { %v2819_v34 = vor.u32 %v3755_v29, %v2818_v28  ;;  %v2546_v35 = vld [vmem:[#allocation2 + $0x68] sm:$0xf]  ;;  %v3719_v40 = vld [vmem:[#allocation2 + $0x174] sm:$0xf0] }
  0x8a   :  { %1812 = vmatpush.bf16.msrb.mxu1 %v3151_v31  ;;  %1825 = vmatpush.bf16.msrb.mxu2 %v3279_v32  ;;  %v3787_v31 = vld [vmem:[#allocation2 + $0x394] sm:$0xf0]  ;;  %v2563_v32 = vor.u32 %v3691_v24, %v2562_v23  ;;  %v2674_v37 = vld [vmem:[#allocation2 + $0x168] sm:$0xf] }
  0x8b   :  { %1838 = vmatpush.bf16.msrb.mxu3 %v3407_v36  ;;  %v3687_v36 = vld [vmem:[#allocation2 + $0x74] sm:$0xf0]  ;;  %v2947_v39 = vor.u32 %v3787_v31, %v2946_v30  ;;  %v2802_v43 = vld [vmem:[#allocation2 + $0x268] sm:$0xf]  ;;  %v2675_v49 = vor.u32 %v3719_v40, %v2674_v37 }
  0x8c   :  { %1800 = vmatpush.bf16.msrb.mxu0 %v3007_v47  ;;  %v3751_v45 = vld [vmem:[#allocation2 + $0x274] sm:$0xf0]  ;;  %v2930_v46 = vld [vmem:[#allocation2 + $0x368] sm:$0xf]  ;;  %v2547_v48 = vor.u32 %v3687_v36, %v2546_v35 }
  0x8d   :  { %v3783_v47 = vld [vmem:[#allocation2 + $0x374] sm:$0xf0]  ;;  %v2803_v50 = vor.u32 %v3751_v45, %v2802_v43  ;;  %v2658_v53 = vld [vmem:[#allocation2 + $0x148] sm:$0xf] }
  0x8e   :  { %1813 = vmatpush.bf16.msrb.mxu1 %v3135_v51  ;;  %1826 = vmatpush.bf16.msrb.mxu2 %v3263_v52  ;;  %v2530_v51 = vld [vmem:[#allocation2 + $0x48] sm:$0xf]  ;;  %v3683_v52 = vld [vmem:[#allocation2 + $0x54] sm:$0xf0]  ;;  %v2931_v54 = vor.u32 %v3783_v47, %v2930_v46 }
  0x8f   :  { %1839 = vmatpush.bf16.msrb.mxu3 %v3391_v55  ;;  %1801 = vmatmul.bf16.vlgmr.msrb.gmra.mxu0 %v4138_v41  ;;  %v3715_v55 = vld [vmem:[#allocation2 + $0x154] sm:$0xf0]  ;;  %v2531_v60 = vor.u32 %v3683_v52, %v2530_v51  ;;  %v2514_v63 = vld [vmem:[#allocation2 + $0x28] sm:$0xf] }
  0x90   :  { %1845 = vmatpush.bf16.msra.mxu0 %v2611_v56  ;;  %v2786_v56 = vld [vmem:[#allocation2 + $0x248] sm:$0xf]  ;;  %v3779_v59 = vld [vmem:[#allocation2 + $0x354] sm:$0xf0]  ;;  %v2659_v61 = vor.u32 %v3715_v55, %v2658_v53 }
  0x91   :  { %1827 = vmatmul.bf16.vlgmr.msrb.gmra.mxu2 %v4136_v38  ;;  %1814 = vmatmul.bf16.vlgmr.msrb.gmra.mxu1 %v4142_v44  ;;  %v3679_v0 = vld [vmem:[#allocation2 + $0x34] sm:$0xf0]  ;;  %v2642_v1 = vld [vmem:[#allocation2 + $0x128] sm:$0xf] }
  0x92   :  { %1858 = vmatpush.bf16.msra.mxu1 %v2739_v57  ;;  %1871 = vmatpush.bf16.msra.mxu2 %v2867_v58  ;;  %v3747_v57 = vld [vmem:[#allocation2 + $0x254] sm:$0xf0]  ;;  %v2914_v58 = vld [vmem:[#allocation2 + $0x348] sm:$0xf]  ;;  %v2515_v8 = vor.u32 %v3679_v0, %v2514_v63 }
  0x93   :  { %1884 = vmatpush.bf16.msra.mxu3 %v2995_v62  ;;  %v2787_v62 = vor.u32 %v3747_v57, %v2786_v56  ;;  %v2915_v2 = vor.u32 %v3779_v59, %v2914_v58  ;;  %v3711_v3 = vld [vmem:[#allocation2 + $0x134] sm:$0xf0]  ;;  %v2498_v9 = vld [vmem:[#allocation2 + $0x8] sm:$0xf] }
  0x94   :  { %1840 = vmatmul.bf16.vlgmr.msrb.gmra.mxu3 %v4140_v42  ;;  %1846 = vmatpush.bf16.msra.mxu0 %v2595_v4  ;;  %v2770_v4 = vld [vmem:[#allocation2 + $0x228] sm:$0xf]  ;;  %v3775_v7 = vld [vmem:[#allocation2 + $0x334] sm:$0xf0]  ;;  %v2643_v11 = vor.u32 %v3711_v3, %v2642_v1 }
  0x95   :  { %v2626_v13 = vld [vmem:[#allocation2 + $0x108] sm:$0xf]  ;;  %v3707_v14 = vld [vmem:[#allocation2 + $0x114] sm:$0xf0] }
  0x96   :  { %1859 = vmatpush.bf16.msra.mxu1 %v2723_v5  ;;  %1872 = vmatpush.bf16.msra.mxu2 %v2851_v6  ;;  %v3743_v5 = vld [vmem:[#allocation2 + $0x234] sm:$0xf0]  ;;  %v2898_v6 = vld [vmem:[#allocation2 + $0x328] sm:$0xf]  ;;  %v2627_v31 = vor.u32 %v3707_v14, %v2626_v13 }
  0x97   :  { %1885 = vmatpush.bf16.msra.mxu3 %v2979_v10  ;;  %v3675_v10 = vld [vmem:[#allocation2 + $0x14] sm:$0xf0]  ;;  %v2771_v12 = vor.u32 %v3743_v5, %v2770_v4  ;;  %v2754_v15 = vld [vmem:[#allocation2 + $0x208] sm:$0xf] }
  0x98   :  { %1847 = vmatpush.bf16.msra.mxu0 %v2579_v16  ;;  %v2899_v16 = vor.u32 %v3775_v7, %v2898_v6  ;;  %v3771_v23 = vld [vmem:[#allocation2 + $0x314] sm:$0xf0]  ;;  %v3122_v24 = vld [vmem:[#allocation2 + $0x4e8] sm:$0xf]  ;;  %v2499_v27 = vor.u32 %v3675_v10, %v2498_v9 }
  0x99   :  { %v3831_v25 = vld [vmem:[#allocation2 + $0x4f4] sm:$0xf0]  ;;  %v3378_v29 = vld [vmem:[#allocation2 + $0x6e8] sm:$0xf] }
  0x9a   :  { %1860 = vmatpush.bf16.msra.mxu1 %v2707_v17  ;;  %1873 = vmatpush.bf16.msra.mxu2 %v2835_v21  ;;  %v3739_v17 = vld [vmem:[#allocation2 + $0x214] sm:$0xf0]  ;;  %v2882_v21 = vld [vmem:[#allocation2 + $0x308] sm:$0xf]  ;;  %v3123_v36 = vor.u32 %v3831_v25, %v3122_v24 }
  0x9b   :  { %1886 = vmatpush.bf16.msra.mxu3 %v2963_v26  ;;  %v3250_v26 = vld [vmem:[#allocation2 + $0x5e8] sm:$0xf]  ;;  %v3863_v28 = vld [vmem:[#allocation2 + $0x5f4] sm:$0xf0]  ;;  %v2883_v35 = vor.u32 %v3771_v23, %v2882_v21 }
  0x9c   :  { %1848 = vmatpush.bf16.msra.mxu0 %v2563_v32  ;;  %v3895_v30 = vld [vmem:[#allocation2 + $0x6f4] sm:$0xf0]  ;;  %v2755_v32 = vor.u32 %v3739_v17, %v2754_v15  ;;  %v3251_v37 = vor.u32 %v3863_v28, %v3250_v26  ;;  %v3106_v40 = vld [vmem:[#allocation2 + $0x4c8] sm:$0xf]  ;;  %v4163_v26 = vld [vmem:[%s4237_s2] sm:$0xf] }
  0x9d   :  { %v3827_v43 = vld [vmem:[#allocation2 + $0x4d4] sm:$0xf0]  ;;  %v3234_v45 = vld [vmem:[#allocation2 + $0x5c8] sm:$0xf] }
  0x9e   :  { %1861 = vmatpush.bf16.msra.mxu1 %v2691_v33  ;;  %1874 = vmatpush.bf16.msra.mxu2 %v2819_v34  ;;  %v3506_v33 = vld [vmem:[#allocation2 + $0x7e8] sm:$0xf]  ;;  %v3927_v34 = vld [vmem:[#allocation2 + $0x7f4] sm:$0xf0]  ;;  %v3107_v52 = vor.u32 %v3827_v43, %v3106_v40 }
  0x9f   :  { %1887 = vmatpush.bf16.msra.mxu3 %v2947_v39  ;;  %v3379_v39 = vor.u32 %v3895_v30, %v3378_v29  ;;  %v3507_v46 = vor.u32 %v3927_v34, %v3506_v33  ;;  %v3859_v47 = vld [vmem:[#allocation2 + $0x5d4] sm:$0xf0]  ;;  %v3090_v55 = vld [vmem:[#allocation2 + $0x4a8] sm:$0xf] }
  0xa0   :  { %1849 = vmatpush.bf16.msra.mxu0 %v2547_v48  ;;  %v3362_v48 = vld [vmem:[#allocation2 + $0x6c8] sm:$0xf]  ;;  %v3923_v51 = vld [vmem:[#allocation2 + $0x7d4] sm:$0xf0]  ;;  %v3235_v53 = vor.u32 %v3859_v47, %v3234_v45 }
  0xa1   :  { %v3823_v56 = vld [vmem:[#allocation2 + $0x4b4] sm:$0xf0]  ;;  %v3218_v57 = vld [vmem:[#allocation2 + $0x5a8] sm:$0xf] }
  0xa2   :  { %1862 = vmatpush.bf16.msra.mxu1 %v2675_v49  ;;  %1875 = vmatpush.bf16.msra.mxu2 %v2803_v50  ;;  %v3891_v49 = vld [vmem:[#allocation2 + $0x6d4] sm:$0xf0]  ;;  %v3490_v50 = vld [vmem:[#allocation2 + $0x7c8] sm:$0xf]  ;;  %v3091_v0 = vor.u32 %v3823_v56, %v3090_v55 }
  0xa3   :  { %1888 = vmatpush.bf16.msra.mxu3 %v2931_v54  ;;  %v3363_v54 = vor.u32 %v3891_v49, %v3362_v48  ;;  %v3491_v58 = vor.u32 %v3923_v51, %v3490_v50  ;;  %v3855_v59 = vld [vmem:[#allocation2 + $0x5b4] sm:$0xf0]  ;;  %v3074_v3 = vld [vmem:[#allocation2 + $0x488] sm:$0xf] }
  0xa4   :  { %1850 = vmatpush.bf16.msra.mxu0 %v2531_v60  ;;  %v3346_v60 = vld [vmem:[#allocation2 + $0x6a8] sm:$0xf]  ;;  %v3919_v63 = vld [vmem:[#allocation2 + $0x7b4] sm:$0xf0]  ;;  %v3219_v1 = vor.u32 %v3855_v59, %v3218_v57 }
  0xa5   :  { %v3819_v4 = vld [vmem:[#allocation2 + $0x494] sm:$0xf0]  ;;  %v3202_v5 = vld [vmem:[#allocation2 + $0x588] sm:$0xf] }
  0xa6   :  { %1863 = vmatpush.bf16.msra.mxu1 %v2659_v61  ;;  %1876 = vmatpush.bf16.msra.mxu2 %v2787_v62  ;;  %v3887_v61 = vld [vmem:[#allocation2 + $0x6b4] sm:$0xf0]  ;;  %v3474_v62 = vld [vmem:[#allocation2 + $0x7a8] sm:$0xf] }
  0xa7   :  { %1889 = vmatpush.bf16.msra.mxu3 %v2915_v2  ;;  %v3347_v2 = vor.u32 %v3887_v61, %v3346_v60  ;;  %v3475_v6 = vor.u32 %v3919_v63, %v3474_v62  ;;  %v3851_v7 = vld [vmem:[#allocation2 + $0x594] sm:$0xf0]  ;;  %v3458_v10 = vld [vmem:[#allocation2 + $0x788] sm:$0xf] }
  0xa8   :  { %1851 = vmatpush.bf16.msra.mxu0 %v2515_v8  ;;  %v3330_v8 = vld [vmem:[#allocation2 + $0x688] sm:$0xf]  ;;  %v3883_v9 = vld [vmem:[#allocation2 + $0x694] sm:$0xf0]  ;;  %v3203_v14 = vor.u32 %v3851_v7, %v3202_v5 }
  0xa9   :  { %v3058_v13 = vld [vmem:[#allocation2 + $0x468] sm:$0xf]  ;;  %v3331_v15 = vor.u32 %v3883_v9, %v3330_v8  ;;  %v3847_v21 = vld [vmem:[#allocation2 + $0x574] sm:$0xf0] }
  0xaa   :  { %1864 = vmatpush.bf16.msra.mxu1 %v2643_v11  ;;  %1877 = vmatpush.bf16.msra.mxu2 %v2771_v12  ;;  %v3915_v11 = vld [vmem:[#allocation2 + $0x794] sm:$0xf0]  ;;  %v3075_v12 = vor.u32 %v3819_v4, %v3074_v3  ;;  %v3186_v17 = vld [vmem:[#allocation2 + $0x568] sm:$0xf] }
  0xab   :  { %1890 = vmatpush.bf16.msra.mxu3 %v2899_v16  ;;  %v3815_v16 = vld [vmem:[#allocation2 + $0x474] sm:$0xf0]  ;;  %v3459_v23 = vor.u32 %v3915_v11, %v3458_v10  ;;  %v3314_v24 = vld [vmem:[#allocation2 + $0x668] sm:$0xf] }
  0xac   :  { %1852 = vmatpush.bf16.msra.mxu0 %v2499_v27  ;;  %v3879_v25 = vld [vmem:[#allocation2 + $0x674] sm:$0xf0]  ;;  %v3442_v27 = vld [vmem:[#allocation2 + $0x768] sm:$0xf]  ;;  %v3059_v29 = vor.u32 %v3815_v16, %v3058_v13  ;;  %v3701_v13 = vld [vmem:[#allocation2 + $0xec] sm:$0xf] }
  0xad   :  { %v3911_v28 = vld [vmem:[#allocation2 + $0x774] sm:$0xf0]  ;;  %v3042_v30 = vld [vmem:[#allocation2 + $0x448] sm:$0xf] }
  0xae   :  { %1865 = vmatpush.bf16.msra.mxu1 %v2627_v31  ;;  %1878 = vmatpush.bf16.msra.mxu2 %v2755_v32  ;;  %v3187_v31 = vor.u32 %v3847_v21, %v3186_v17  ;;  %v3315_v32 = vor.u32 %v3879_v25, %v3314_v24  ;;  %v3811_v33 = vld [vmem:[#allocation2 + $0x454] sm:$0xf0]  ;;  %v3170_v34 = vld [vmem:[#allocation2 + $0x548] sm:$0xf]  ;;  %v2740_v17 = vld [vmem:[#allocation2 + $0x1f8] sm:$0xf0] }
  0xaf   :  { %1891 = vmatpush.bf16.msra.mxu3 %v2883_v35  ;;  %1853 = vmatmul.bf16.vlgmr.msra.gmra.mxu0 %v4120_v19  ;;  %v321_v35 = vperm.slane %v4163_v26, 0  ;;  %v3875_v40 = vld [vmem:[#allocation2 + $0x654] sm:$0xf0]  ;;  %v3426_v43 = vld [vmem:[#allocation2 + $0x748] sm:$0xf] }
  0xb0   :  { %1897 = vmatpush.bf16.msrb.mxu0 %v3123_v36  ;;  %v3443_v36 = vor.u32 %v3911_v28, %v3442_v27  ;;  %v3907_v45 = vld [vmem:[#allocation2 + $0x754] sm:$0xf0]  ;;  %v3026_v50 = vld [vmem:[#allocation2 + $0x428] sm:$0xf]  ;;  %v3765_v21 = vld [vmem:[#allocation2 + $0x2ec] sm:$0xf] }
  0xb1   :  { %1879 = vmatmul.bf16.vlgmr.msra.gmra.mxu2 %v4118_v18  ;;  %1866 = vmatmul.bf16.vlgmr.msra.gmra.mxu1 %v4124_v22  ;;  %v3807_v51 = vld [vmem:[#allocation2 + $0x434] sm:$0xf0]  ;;  %v3427_v55 = vor.u32 %v3907_v45, %v3426_v43  ;;  %v3282_v57 = vld [vmem:[#allocation2 + $0x628] sm:$0xf]  ;;  %v2724_v43 = vld [vmem:[#allocation2 + $0x1d8] sm:$0xf0] }
  0xb2   :  { %1910 = vmatpush.bf16.msrb.mxu1 %v3251_v37  ;;  %1923 = vmatpush.bf16.msrb.mxu2 %v3379_v39  ;;  %v3843_v37 = vld [vmem:[#allocation2 + $0x554] sm:$0xf0]  ;;  %v3298_v39 = vld [vmem:[#allocation2 + $0x648] sm:$0xf]  ;;  %v3027_v62 = vor.u32 %v3807_v51, %v3026_v50  ;;  %v3761_v45 = vld [vmem:[#allocation2 + $0x2cc] sm:$0xf] }
  0xb3   :  { %1936 = vmatpush.bf16.msrb.mxu3 %v3507_v46  ;;  %v3043_v46 = vor.u32 %v3811_v33, %v3042_v30  ;;  %v3171_v48 = vor.u32 %v3843_v37, %v3170_v34  ;;  %v3299_v49 = vor.u32 %v3875_v40, %v3298_v39  ;;  %v3839_v56 = vld [vmem:[#allocation2 + $0x534] sm:$0xf0]  ;;  %v3410_v59 = vld [vmem:[#allocation2 + $0x728] sm:$0xf]  ;;  %v2996_v30 = vld [vmem:[#allocation2 + $0x3f8] sm:$0xf0] }
  0xb4   :  { %1892 = vmatmul.bf16.vlgmr.msra.gmra.mxu3 %v4122_v20  ;;  %1898 = vmatpush.bf16.msrb.mxu0 %v3107_v52  ;;  %v3154_v52 = vld [vmem:[#allocation2 + $0x528] sm:$0xf]  ;;  %v3903_v60 = vld [vmem:[#allocation2 + $0x734] sm:$0xf0]  ;;  %v2596_v37 = vld [vmem:[#allocation2 + $0xd8] sm:$0xf0] }
  0xb5   :  { %v3010_v63 = vld [vmem:[#allocation2 + $0x408] sm:$0xf]  ;;  %v3835_v4 = vld [vmem:[#allocation2 + $0x514] sm:$0xf0]  ;;  %v3411_v7 = vor.u32 %v3903_v60, %v3410_v59  ;;  %v3729_v39 = vld [vmem:[#allocation2 + $0x1cc] sm:$0xf] }
  0xb6   :  { %1911 = vmatpush.bf16.msrb.mxu1 %v3235_v53  ;;  %1924 = vmatpush.bf16.msrb.mxu2 %v3363_v54  ;;  %v3138_v3 = vld [vmem:[#allocation2 + $0x508] sm:$0xf]  ;;  %v3867_v8 = vld [vmem:[#allocation2 + $0x614] sm:$0xf0]  ;;  %v3757_v59 = vld [vmem:[#allocation2 + $0x2ac] sm:$0xf] }
  0xb7   :  { %1937 = vmatpush.bf16.msrb.mxu3 %v3491_v58  ;;  %v3871_v58 = vld [vmem:[#allocation2 + $0x634] sm:$0xf0]  ;;  %v3266_v5 = vld [vmem:[#allocation2 + $0x608] sm:$0xf]  ;;  %v3139_v27 = vor.u32 %v3835_v4, %v3138_v3  ;;  %v2836_v60 = vld [vmem:[#allocation2 + $0x2b8] sm:$0xf0] }
  0xb8   :  { %1899 = vmatpush.bf16.msrb.mxu0 %v3091_v0  ;;  %v3803_v0 = vld [vmem:[#allocation2 + $0x414] sm:$0xf0]  ;;  %v3394_v9 = vld [vmem:[#allocation2 + $0x708] sm:$0xf]  ;;  %v3267_v28 = vor.u32 %v3867_v8, %v3266_v5  ;;  %v2564_v3 = vld [vmem:[#allocation2 + $0x98] sm:$0xf0] }
  0xb9   :  { %v3899_v10 = vld [vmem:[#allocation2 + $0x714] sm:$0xf0]  ;;  %v3011_v16 = vor.u32 %v3803_v0, %v3010_v63  ;;  %v3721_v4 = vld [vmem:[#allocation2 + $0x18c] sm:$0xf]  ;;  %v2820_v8 = vld [vmem:[#allocation2 + $0x298] sm:$0xf0] }
  0xba   :  { %1912 = vmatpush.bf16.msrb.mxu1 %v3219_v1  ;;  %1925 = vmatpush.bf16.msrb.mxu2 %v3347_v2  ;;  %v1646_v47 = vpop.f32.mrf.mxu0  ;;  %v1659_v54 = vpop.f32.mrf.mxu1  ;;  %v3155_v1 = vor.u32 %v3839_v56, %v3154_v52  ;;  %v3283_v2 = vor.u32 %v3871_v58, %v3282_v57  ;;  %v2727_v52 = vor.u32 %v3729_v39, %v2724_v43  ;;  %v3725_v56 = vld [vmem:[#allocation2 + $0x1ac] sm:$0xf]  ;;  %v2708_v58 = vld [vmem:[#allocation2 + $0x1b8] sm:$0xf0] }
  0xbb   :  { %1938 = vmatpush.bf16.msrb.mxu3 %v3475_v6  ;;  %v1647_v53 = vadd.f32 %v1646_v47, %v321_v35  ;;  %v1672_v6 = vpop.f32.mrf.mxu2  ;;  %v3793_v47 = vld [vmem:[#allocation2 + $0x3cc] sm:$0xf]  ;;  %v2711_v0 = vor.u32 %v3725_v56, %v2708_v58  ;;  %v2660_v43 = vld [vmem:[#allocation2 + $0x158] sm:$0xf0] }
  0xbc   :  { %1900 = vmatpush.bf16.msrb.mxu0 %v3075_v12  ;;  %v1685_v12 = vpop.f32.mrf.mxu3  ;;  %v3713_v39 = vld [vmem:[#allocation2 + $0x14c] sm:$0xf] }
  0xbd   :  { %v1660_v61 = vadd.f32 %v1659_v54, %v1647_v53  ;;  %v3693_v54 = vld [vmem:[#allocation2 + $0xac] sm:$0xf] }
  0xbe   :  { %1913 = vmatpush.bf16.msrb.mxu1 %v3203_v14  ;;  %1926 = vmatpush.bf16.msrb.mxu2 %v3331_v15  ;;  %v2612_v14 = vld [vmem:[#allocation2 + $0xf8] sm:$0xf0]  ;;  %v3733_v15 = vld [vmem:[#allocation2 + $0x1ec] sm:$0xf] }
  0xbf   :  { %1939 = vmatpush.bf16.msrb.mxu3 %v3459_v23  ;;  %v1673_v11 = vadd.f32 %v1672_v6, %v1660_v61  ;;  %v2868_v23 = vld [vmem:[#allocation2 + $0x2f8] sm:$0xf0]  ;;  %v2615_v33 = vor.u32 %v3701_v13, %v2612_v14  ;;  %v2743_v34 = vor.u32 %v3733_v15, %v2740_v17  ;;  %v3789_v61 = vld [vmem:[#allocation2 + $0x3ac] sm:$0xf] }
  0xc0   :  { %1901 = vmatpush.bf16.msrb.mxu0 %v3059_v29  ;;  %v3797_v29 = vld [vmem:[#allocation2 + $0x3ec] sm:$0xf]  ;;  %v2871_v35 = vor.u32 %v3765_v21, %v2868_v23  ;;  %v2692_v6 = vld [vmem:[#allocation2 + $0x198] sm:$0xf0] }
  0xc1   :  { %v4166_v24 = vadd.f32 %v1685_v12, %v1673_v11  ;;  %v2999_v40 = vor.u32 %v3797_v29, %v2996_v30  ;;  %v2695_v13 = vor.u32 %v3721_v4, %v2692_v6  ;;  %v3685_v15 = vld [vmem:[#allocation2 + $0x6c] sm:$0xf]  ;;  %v2804_v29 = vld [vmem:[#allocation2 + $0x278] sm:$0xf0] }
  0xc2   :  { %1914 = vmatpush.bf16.msrb.mxu1 %v3187_v31  ;;  %1927 = vmatpush.bf16.msrb.mxu2 %v3315_v32  ;;  %v1648_v25 = vpop.f32.mrf.mxu0  ;;  %v1661_v31 = vpop.f32.mrf.mxu1  ;;  %v3395_v32 = vor.u32 %v3899_v10, %v3394_v9  ;;  %v3785_v9 = vld [vmem:[#allocation2 + $0x38c] sm:$0xf]  ;;  %v2948_v10 = vld [vmem:[#allocation2 + $0x398] sm:$0xf0] }
  0xc3   :  { %1940 = vmatpush.bf16.msrb.mxu3 %v3443_v36  ;;  %v3697_v36 = vld [vmem:[#allocation2 + $0xcc] sm:$0xf]  ;;  %v2951_v25 = vor.u32 %v3785_v9, %v2948_v10  ;;  %v2932_v31 = vld [vmem:[#allocation2 + $0x378] sm:$0xf0] }
  0xc4   :  { %1902 = vmatpush.bf16.msrb.mxu0 %v3043_v46  ;;  %v2852_v46 = vld [vmem:[#allocation2 + $0x2d8] sm:$0xf0]  ;;  %v2599_v50 = vor.u32 %v3697_v36, %v2596_v37  ;;  %v1687_v51 = vpop.f32.mrf.mxu3  ;;  %v3717_v17 = vld [vmem:[#allocation2 + $0x16c] sm:$0xf] }
  0xc5   :  { %v2855_v53 = vor.u32 %v3761_v45, %v2852_v46  ;;  %v3781_v30 = vld [vmem:[#allocation2 + $0x36c] sm:$0xf]  ;;  %v2532_v37 = vld [vmem:[#allocation2 + $0x58] sm:$0xf0] }
  0xc6   :  { %1915 = vmatpush.bf16.msrb.mxu1 %v3171_v48  ;;  %1928 = vmatpush.bf16.msrb.mxu2 %v3299_v49  ;;  %v2980_v48 = vld [vmem:[#allocation2 + $0x3d8] sm:$0xf0]  ;;  %v1674_v49 = vpop.f32.mrf.mxu2  ;;  %v3681_v36 = vld [vmem:[#allocation2 + $0x4c] sm:$0xf] }
  0xc7   :  { %1941 = vmatpush.bf16.msrb.mxu3 %v3427_v55  ;;  %v2580_v55 = vld [vmem:[#allocation2 + $0xb8] sm:$0xf0]  ;;  %v2983_v57 = vor.u32 %v3793_v47, %v2980_v48  ;;  %v3745_v45 = vld [vmem:[#allocation2 + $0x24c] sm:$0xf]  ;;  %v2535_v51 = vor.u32 %v3681_v36, %v2532_v37 }
  0xc8   :  { %1903 = vmatpush.bf16.msrb.mxu0 %v3027_v62  ;;  %v2964_v62 = vld [vmem:[#allocation2 + $0x3b8] sm:$0xf0]  ;;  %v2583_v63 = vor.u32 %v3693_v54, %v2580_v55  ;;  %v3777_v49 = vld [vmem:[#allocation2 + $0x34c] sm:$0xf]  ;;  %v2663_v54 = vor.u32 %v3713_v39, %v2660_v43 }
  0xc9   :  { %v2967_v5 = vor.u32 %v3789_v61, %v2964_v62  ;;  %v2788_v46 = vld [vmem:[#allocation2 + $0x258] sm:$0xf0]  ;;  %v3677_v56 = vld [vmem:[#allocation2 + $0x2c] sm:$0xf] }
  0xca   :  { %1916 = vmatpush.bf16.msrb.mxu1 %v3155_v1  ;;  %1929 = vmatpush.bf16.msrb.mxu2 %v3283_v2  ;;  %v2839_v1 = vor.u32 %v3757_v59, %v2836_v60  ;;  %v3689_v2 = vld [vmem:[#allocation2 + $0x8c] sm:$0xf]  ;;  %v2791_v55 = vor.u32 %v3745_v45, %v2788_v46  ;;  %v2644_v61 = vld [vmem:[#allocation2 + $0x138] sm:$0xf0] }
  0xcb   :  { %1942 = vmatpush.bf16.msrb.mxu3 %v3411_v7  ;;  %v3753_v7 = vld [vmem:[#allocation2 + $0x28c] sm:$0xf]  ;;  %v2567_v11 = vor.u32 %v3689_v2, %v2564_v3  ;;  %v2500_v4 = vld [vmem:[#allocation2 + $0x18] sm:$0xf0] }
  0xcc   :  { %1904 = vmatpush.bf16.msrb.mxu0 %v3011_v16  ;;  %v2823_v14 = vor.u32 %v3753_v7, %v2820_v8  ;;  %v2548_v16 = vld [vmem:[#allocation2 + $0x78] sm:$0xf0]  ;;  %v3709_v58 = vld [vmem:[#allocation2 + $0x12c] sm:$0xf] }
  0xcd   :  { %v3741_v62 = vld [vmem:[#allocation2 + $0x22c] sm:$0xf]  ;;  %v2628_v8 = vld [vmem:[#allocation2 + $0x118] sm:$0xf0] }
  0xce   :  { %1917 = vmatpush.bf16.msrb.mxu1 %v3139_v27  ;;  %1930 = vmatpush.bf16.msrb.mxu2 %v3267_v28  ;;  %v1698_v12 = vpop.f32.mrf.mxu0  ;;  %v2676_v27 = vld [vmem:[#allocation2 + $0x178] sm:$0xf0]  ;;  %v3749_v28 = vld [vmem:[#allocation2 + $0x26c] sm:$0xf] }
  0xcf   :  { %1943 = vmatpush.bf16.msrb.mxu3 %v3395_v32  ;;  %1905 = vmatmul.bf16.vlgmr.msrb.gmra.mxu0 %v4138_v41  ;;  %v1699_v21 = vadd.f32 %v1698_v12, %v4166_v24  ;;  %v2935_v24 = vor.u32 %v3781_v30, %v2932_v31  ;;  %v3673_v3 = vld [vmem:[#allocation2 + $0xc] sm:$0xf]  ;;  %v2756_v12 = vld [vmem:[#allocation2 + $0x218] sm:$0xf0] }
  0xd0   :  { %1949 = vmatpush.bf16.msra.mxu0 %v2615_v33  ;;  %v1711_v23 = vpop.f32.mrf.mxu1  ;;  %v2551_v33 = vor.u32 %v3685_v15, %v2548_v16  ;;  %v3705_v7 = vld [vmem:[#allocation2 + $0x10c] sm:$0xf]  ;;  %v3108_v39 = vld [vmem:[#allocation2 + $0x4d8] sm:$0xf0] }
  0xd1   :  { %1931 = vmatmul.bf16.vlgmr.msrb.gmra.mxu2 %v4136_v38  ;;  %1918 = vmatmul.bf16.vlgmr.msrb.gmra.mxu1 %v4142_v44  ;;  %v1712_v32 = vadd.f32 %v1711_v23, %v1699_v21  ;;  %v3737_v9 = vld [vmem:[#allocation2 + $0x20c] sm:$0xf]  ;;  %v2503_v23 = vor.u32 %v3673_v3, %v2500_v4  ;;  %v3236_v43 = vld [vmem:[#allocation2 + $0x5d8] sm:$0xf0] }
  0xd2   :  { %1962 = vmatpush.bf16.msra.mxu1 %v2743_v34  ;;  %1975 = vmatpush.bf16.msra.mxu2 %v2871_v35  ;;  %v2679_v34 = vor.u32 %v3717_v17, %v2676_v27  ;;  %v2807_v35 = vor.u32 %v3749_v28, %v2804_v29  ;;  %v3829_v16 = vld [vmem:[#allocation2 + $0x4ec] sm:$0xf]  ;;  %v3124_v17 = vld [vmem:[#allocation2 + $0x4f8] sm:$0xf0]  ;;  %v2631_v29 = vor.u32 %v3705_v7, %v2628_v8 }
  0xd3   :  { %1988 = vmatpush.bf16.msra.mxu3 %v2999_v40  ;;  %v3861_v21 = vld [vmem:[#allocation2 + $0x5ec] sm:$0xf]  ;;  %v3380_v28 = vld [vmem:[#allocation2 + $0x6f8] sm:$0xf0]  ;;  %v2759_v30 = vor.u32 %v3737_v9, %v2756_v12 }
  0xd4   :  { %1944 = vmatmul.bf16.vlgmr.msrb.gmra.mxu3 %v4140_v42  ;;  %1950 = vmatpush.bf16.msra.mxu0 %v2599_v50  ;;  %v1724_v40 = vpop.f32.mrf.mxu2  ;;  %v2916_v50 = vld [vmem:[#allocation2 + $0x358] sm:$0xf0]  ;;  %v3893_v27 = vld [vmem:[#allocation2 + $0x6ec] sm:$0xf] }
  0xd5   :  { %v1725_v47 = vadd.f32 %v1724_v40, %v1712_v32  ;;  %v2919_v60 = vor.u32 %v3777_v49, %v2916_v50  ;;  %v3925_v31 = vld [vmem:[#allocation2 + $0x7ec] sm:$0xf]  ;;  %v3508_v32 = vld [vmem:[#allocation2 + $0x7f8] sm:$0xf0]  ;;  %v3383_v36 = vor.u32 %v3893_v27, %v3380_v28 }
  0xd6   :  { %1963 = vmatpush.bf16.msra.mxu1 %v2727_v52  ;;  %1976 = vmatpush.bf16.msra.mxu2 %v2855_v53  ;;  %v1700_v53 = vpop.f32.mrf.mxu0  ;;  %v3825_v37 = vld [vmem:[#allocation2 + $0x4cc] sm:$0xf]  ;;  %v3364_v46 = vld [vmem:[#allocation2 + $0x6d8] sm:$0xf0] }
  0xd7   :  { %1989 = vmatpush.bf16.msra.mxu3 %v2983_v57  ;;  %v1737_v48 = vpop.f32.mrf.mxu3  ;;  %v2516_v57 = vld [vmem:[#allocation2 + $0x38] sm:$0xf0]  ;;  %v3857_v40 = vld [vmem:[#allocation2 + $0x5cc] sm:$0xf]  ;;  %v3111_v49 = vor.u32 %v3825_v37, %v3108_v39 }
  0xd8   :  { %1951 = vmatpush.bf16.msra.mxu0 %v2583_v63  ;;  %v4173_v52 = vadd.f32 %v1737_v48, %v1725_v47  ;;  %v1713_v59 = vpop.f32.mrf.mxu1  ;;  %v2772_v63 = vld [vmem:[#allocation2 + $0x238] sm:$0xf0]  ;;  %v2519_v2 = vor.u32 %v3677_v56, %v2516_v57  ;;  %v3889_v45 = vld [vmem:[#allocation2 + $0x6cc] sm:$0xf]  ;;  %v3239_v50 = vor.u32 %v3857_v40, %v3236_v43 }
  0xd9   :  { %v2775_v6 = vor.u32 %v3741_v62, %v2772_v63  ;;  %v3921_v47 = vld [vmem:[#allocation2 + $0x7cc] sm:$0xf]  ;;  %v3492_v48 = vld [vmem:[#allocation2 + $0x7d8] sm:$0xf0] }
  0xda   :  { %1964 = vmatpush.bf16.msra.mxu1 %v2711_v0  ;;  %1977 = vmatpush.bf16.msra.mxu2 %v2839_v1  ;;  %v3773_v0 = vld [vmem:[#allocation2 + $0x32c] sm:$0xf]  ;;  %v2900_v1 = vld [vmem:[#allocation2 + $0x338] sm:$0xf0]  ;;  %v3495_v56 = vor.u32 %v3921_v47, %v3492_v48 }
  0xdb   :  { %1990 = vmatpush.bf16.msra.mxu3 %v2967_v5  ;;  %v2647_v5 = vor.u32 %v3709_v58, %v2644_v61  ;;  %v3821_v53 = vld [vmem:[#allocation2 + $0x4ac] sm:$0xf]  ;;  %v3220_v57 = vld [vmem:[#allocation2 + $0x5b8] sm:$0xf0] }
  0xdc   :  { %1952 = vmatpush.bf16.msra.mxu0 %v2567_v11  ;;  %v1726_v10 = vpop.f32.mrf.mxu2  ;;  %v2903_v11 = vor.u32 %v3773_v0, %v2900_v1  ;;  %v3885_v58 = vld [vmem:[#allocation2 + $0x6ac] sm:$0xf]  ;;  %v3348_v59 = vld [vmem:[#allocation2 + $0x6b8] sm:$0xf0] }
  0xdd   :  { %v3476_v61 = vld [vmem:[#allocation2 + $0x7b8] sm:$0xf0]  ;;  %v3351_v0 = vor.u32 %v3885_v58, %v3348_v59  ;;  %v3817_v1 = vld [vmem:[#allocation2 + $0x48c] sm:$0xf]  ;;  %v322_v58 = vperm.slane %v4163_v26, 1 }
  0xde   :  { %1965 = vmatpush.bf16.msra.mxu1 %v2695_v13  ;;  %1978 = vmatpush.bf16.msra.mxu2 %v2823_v14  ;;  %v3769_v13 = vld [vmem:[#allocation2 + $0x30c] sm:$0xf]  ;;  %v2884_v14 = vld [vmem:[#allocation2 + $0x318] sm:$0xf0] }
  0xdf   :  { %1991 = vmatpush.bf16.msra.mxu3 %v2951_v25  ;;  %v1739_v15 = vpop.f32.mrf.mxu3  ;;  %v3252_v25 = vld [vmem:[#allocation2 + $0x5f8] sm:$0xf0]  ;;  %v3913_v7 = vld [vmem:[#allocation2 + $0x78c] sm:$0xf] }
  0xe0   :  { %1953 = vmatpush.bf16.msra.mxu0 %v2551_v33  ;;  %v2887_v33 = vor.u32 %v3769_v13, %v2884_v14  ;;  %v3204_v4 = vld [vmem:[#allocation2 + $0x598] sm:$0xf0]  ;;  %v3813_v10 = vld [vmem:[#allocation2 + $0x46c] sm:$0xf] }
  0xe1   :  { %v3845_v12 = vld [vmem:[#allocation2 + $0x56c] sm:$0xf]  ;;  %v3188_v15 = vld [vmem:[#allocation2 + $0x578] sm:$0xf0] }
  0xe2   :  { %1966 = vmatpush.bf16.msra.mxu1 %v2679_v34  ;;  %1979 = vmatpush.bf16.msra.mxu2 %v2807_v35  ;;  %v3127_v34 = vor.u32 %v3829_v16, %v3124_v17  ;;  %v3255_v35 = vor.u32 %v3861_v21, %v3252_v25  ;;  %v3877_v16 = vld [vmem:[#allocation2 + $0x66c] sm:$0xf]  ;;  %v3316_v17 = vld [vmem:[#allocation2 + $0x678] sm:$0xf0]  ;;  %v3191_v27 = vor.u32 %v3845_v12, %v3188_v15  ;;  %v3934_v15 = vld [vmem:[#allocation5 + $0x30] sm:$0xff] }
  0xe3   :  { %1992 = vmatpush.bf16.msra.mxu3 %v2935_v24  ;;  %v3511_v24 = vor.u32 %v3925_v31, %v3508_v32  ;;  %v3909_v21 = vld [vmem:[#allocation2 + $0x76c] sm:$0xf]  ;;  %v3319_v28 = vor.u32 %v3877_v16, %v3316_v17  ;;  %v3428_v40 = vld [vmem:[#allocation2 + $0x758] sm:$0xf0] }
  0xe4   :  { %1954 = vmatpush.bf16.msra.mxu0 %v2535_v51  ;;  %v3367_v51 = vor.u32 %v3889_v45, %v3364_v46  ;;  %v3841_v31 = vld [vmem:[#allocation2 + $0x54c] sm:$0xf]  ;;  %v3028_v48 = vld [vmem:[#allocation2 + $0x438] sm:$0xf0] }
  0xe5   :  { %v3905_v39 = vld [vmem:[#allocation2 + $0x74c] sm:$0xf]  ;;  %v3943_v12 = vld [vmem:[#allocation5 + $0x78] sm:$0xff] }
  0xe6   :  { %1967 = vmatpush.bf16.msra.mxu1 %v2663_v54  ;;  %1980 = vmatpush.bf16.msra.mxu2 %v2791_v55  ;;  %v3092_v54 = vld [vmem:[#allocation2 + $0x4b8] sm:$0xf0]  ;;  %v3853_v55 = vld [vmem:[#allocation2 + $0x5ac] sm:$0xf] }
  0xe7   :  { %1993 = vmatpush.bf16.msra.mxu3 %v2919_v60  ;;  %v3917_v60 = vld [vmem:[#allocation2 + $0x7ac] sm:$0xf]  ;;  %v3095_v62 = vor.u32 %v3821_v53, %v3092_v54  ;;  %v3223_v63 = vor.u32 %v3853_v55, %v3220_v57  ;;  %v3156_v53 = vld [vmem:[#allocation2 + $0x538] sm:$0xf0] }
  0xe8   :  { %1955 = vmatpush.bf16.msra.mxu0 %v2519_v2  ;;  %v3076_v2 = vld [vmem:[#allocation2 + $0x498] sm:$0xf0]  ;;  %v3479_v3 = vor.u32 %v3917_v60, %v3476_v61  ;;  %v3805_v47 = vld [vmem:[#allocation2 + $0x42c] sm:$0xf] }
  0xe9   :  { %v3869_v54 = vld [vmem:[#allocation2 + $0x62c] sm:$0xf]  ;;  %v3284_v55 = vld [vmem:[#allocation2 + $0x638] sm:$0xf0]  ;;  %v3031_v59 = vor.u32 %v3805_v47, %v3028_v48 }
  0xea   :  { %1968 = vmatpush.bf16.msra.mxu1 %v2647_v5  ;;  %1981 = vmatpush.bf16.msra.mxu2 %v2775_v6  ;;  %v3881_v5 = vld [vmem:[#allocation2 + $0x68c] sm:$0xf]  ;;  %v3332_v6 = vld [vmem:[#allocation2 + $0x698] sm:$0xf0]  ;;  %v3287_v61 = vor.u32 %v3869_v54, %v3284_v55 }
  0xeb   :  { %1994 = vmatpush.bf16.msra.mxu3 %v2903_v11  ;;  %v3335_v9 = vor.u32 %v3881_v5, %v3332_v6  ;;  %v3060_v11 = vld [vmem:[#allocation2 + $0x478] sm:$0xf0]  ;;  %v3897_v6 = vld [vmem:[#allocation2 + $0x70c] sm:$0xf] }
  0xec   :  { %1956 = vmatpush.bf16.msra.mxu0 %v2503_v23  ;;  %v4179_v8 = vpop.f32.mrf.mxu0  ;;  %v3444_v23 = vld [vmem:[#allocation2 + $0x778] sm:$0xf0]  ;;  %v3063_v25 = vor.u32 %v3813_v10, %v3060_v11 }
  0xed   :  { %v3412_v57 = vld [vmem:[#allocation2 + $0x738] sm:$0xf0] }
  0xee   :  { %1969 = vmatpush.bf16.msra.mxu1 %v2631_v29  ;;  %1982 = vmatpush.bf16.msra.mxu2 %v2759_v30  ;;  %v4181_v13 = vpop.f32.mrf.mxu1  ;;  %v3809_v29 = vld [vmem:[#allocation2 + $0x44c] sm:$0xf]  ;;  %v3044_v30 = vld [vmem:[#allocation2 + $0x458] sm:$0xf0] }
  0xef   :  { %1995 = vmatpush.bf16.msra.mxu3 %v2887_v33  ;;  %1957 = vmatmul.bf16.vlgmr.msra.gmra.mxu0 %v4120_v19  ;;  %v3460_v19 = vld [vmem:[#allocation2 + $0x798] sm:$0xf0]  ;;  %v3447_v33 = vor.u32 %v3909_v21, %v3444_v23  ;;  %v3941_v23 = vld [vmem:[#allocation5 + $0x68] sm:$0xff] }
  0xf0   :  { %2001 = vmatpush.bf16.msrb.mxu0 %v3127_v34  ;;  %v3463_v14 = vor.u32 %v3913_v7, %v3460_v19  ;;  %v3172_v34 = vld [vmem:[#allocation2 + $0x558] sm:$0xf0]  ;;  %v1751_v19 = vadd.f32 %v4179_v8, %v322_v58  ;;  %v3942_v8 = vld [vmem:[#allocation5 + $0x70] sm:$0xff] }
  0xf1   :  { %1983 = vmatmul.bf16.vlgmr.msra.gmra.mxu2 %v4118_v18  ;;  %1970 = vmatmul.bf16.vlgmr.msra.gmra.mxu1 %v4124_v22  ;;  %v3849_v18 = vld [vmem:[#allocation2 + $0x58c] sm:$0xf]  ;;  %v3175_v45 = vor.u32 %v3841_v31, %v3172_v34  ;;  %v3396_v7 = vld [vmem:[#allocation2 + $0x718] sm:$0xf0]  ;;  %v3930_v34 = vld [vmem:[#allocation5 + $0x10] sm:$0xff] }
  0xf2   :  { %2014 = vmatpush.bf16.msrb.mxu1 %v3255_v35  ;;  %2027 = vmatpush.bf16.msrb.mxu2 %v3383_v36  ;;  %v3207_v22 = vor.u32 %v3849_v18, %v3204_v4  ;;  %v3873_v35 = vld [vmem:[#allocation2 + $0x64c] sm:$0xf]  ;;  %v3300_v36 = vld [vmem:[#allocation2 + $0x658] sm:$0xf0]  ;;  %v3399_v10 = vor.u32 %v3897_v6, %v3396_v7  ;;  %v3946_v58 = vld [vmem:[#allocation5 + $0x90] sm:$0xff] }
  0xf3   :  { %2040 = vmatpush.bf16.msrb.mxu3 %v3511_v24  ;;  %v3047_v24 = vor.u32 %v3809_v29, %v3044_v30  ;;  %v3303_v46 = vor.u32 %v3873_v35, %v3300_v36  ;;  %v3140_v18 = vld [vmem:[#allocation2 + $0x518] sm:$0xf0]  ;;  %v3950_v30 = vld [vmem:[#allocation5 + $0xb0] sm:$0xff] }
  0xf4   :  { %1996 = vmatmul.bf16.vlgmr.msra.gmra.mxu3 %v4122_v20  ;;  %2002 = vmatpush.bf16.msrb.mxu0 %v3111_v49  ;;  %v3079_v20 = vor.u32 %v3817_v1, %v3076_v2  ;;  %v4183_v32 = vpop.f32.mrf.mxu2  ;;  %v1752_v43 = vpop.f32.mrf.mxu0  ;;  %v3837_v49 = vld [vmem:[#allocation2 + $0x52c] sm:$0xf]  ;;  %v3268_v4 = vld [vmem:[#allocation2 + $0x618] sm:$0xf0] }
  0xf5   :  { %v3159_v60 = vor.u32 %v3837_v49, %v3156_v53  ;;  %v3935_v11 = vld [vmem:[#allocation5 + $0x38] sm:$0xff]  ;;  %v3929_v43 = vld [vmem:[#allocation5 + $0x8] sm:$0xff]  ;;  %v3936_v53 = vld [vmem:[#allocation5 + $0x40] sm:$0xff] }
  0xf6   :  { %2015 = vmatpush.bf16.msrb.mxu1 %v3239_v50  ;;  %2028 = vmatpush.bf16.msrb.mxu2 %v3367_v51  ;;  %v1765_v50 = vpop.f32.mrf.mxu1  ;;  %v3431_v51 = vor.u32 %v3905_v39, %v3428_v40  ;;  %v3951_v16 = vld [vmem:[#allocation5 + $0xb8] sm:$0xff]  ;;  %v3938_v39 = vld [vmem:[#allocation5 + $0x50] sm:$0xff] }
  0xf7   :  { %2041 = vmatpush.bf16.msrb.mxu3 %v3495_v56  ;;  %v4185_v37 = vpop.f32.mrf.mxu3  ;;  %v3901_v56 = vld [vmem:[#allocation2 + $0x72c] sm:$0xf]  ;;  %v3928_v50 = vld [vmem:[#allocation5] sm:$0xff] }
  0xf8   :  { %2003 = vmatpush.bf16.msrb.mxu0 %v3095_v62  ;;  %v3801_v62 = vld [vmem:[#allocation2 + $0x40c] sm:$0xf]  ;;  %v3415_v2 = vor.u32 %v3901_v56, %v3412_v57 }
  0xfa   :  { %2016 = vmatpush.bf16.msrb.mxu1 %v3223_v63  ;;  %2029 = vmatpush.bf16.msrb.mxu2 %v3351_v0  ;;  %v3012_v63 = vld [vmem:[#allocation2 + $0x418] sm:$0xf0]  ;;  %v3833_v0 = vld [vmem:[#allocation2 + $0x50c] sm:$0xf] }
  0xfb   :  { %2042 = vmatpush.bf16.msrb.mxu3 %v3479_v3  ;;  %v3865_v3 = vld [vmem:[#allocation2 + $0x60c] sm:$0xf] }
  0xfc   :  { %2004 = vmatpush.bf16.msrb.mxu0 %v3079_v20  ;;  %v1778_v1 = vpop.f32.mrf.mxu2  ;;  %v3015_v20 = vor.u32 %v3801_v62, %v3012_v63 }
  0xfe   :  { %2017 = vmatpush.bf16.msrb.mxu1 %v3207_v22  ;;  %2030 = vmatpush.bf16.msrb.mxu2 %v3335_v9  ;;  %v3143_v22 = vor.u32 %v3833_v0, %v3140_v18  ;;  %v3271_v9 = vor.u32 %v3865_v3, %v3268_v4  ;;  %v3944_v0 = vld [vmem:[#allocation5 + $0x80] sm:$0xff] }
  0xff   :  { %2043 = vmatpush.bf16.msrb.mxu3 %v3463_v14  ;;  %v1791_v5 = vpop.f32.mrf.mxu3  ;;  %v1764_v14 = vadd.f32 %v4181_v13, %v1751_v19  ;;  %v3933_v13 = vld [vmem:[#allocation5 + $0x28] sm:$0xff] }
 0x100   :  { %2005 = vmatpush.bf16.msrb.mxu0 %v3063_v25  ;;  %v3932_v25 = vld [vmem:[#allocation5 + $0x20] sm:$0xff] }
 0x101   :  { %v1777_v17 = vadd.f32 %v4183_v32, %v1764_v14 }
 0x102   :  { %2018 = vmatpush.bf16.msrb.mxu1 %v3191_v27  ;;  %2031 = vmatpush.bf16.msrb.mxu2 %v3319_v28 }
 0x103   :  { %2044 = vmatpush.bf16.msrb.mxu3 %v3447_v33  ;;  %v1790_v21 = vadd.f32 %v4185_v37, %v1777_v17  ;;  %v3949_v33 = vld [vmem:[#allocation5 + $0xa8] sm:$0xff]  ;;  %v3948_v37 = vld [vmem:[#allocation5 + $0xa0] sm:$0xff] }
 0x104   :  { %2006 = vmatpush.bf16.msrb.mxu0 %v3047_v24 }
 0x106   :  { %2019 = vmatpush.bf16.msrb.mxu1 %v3175_v45  ;;  %2032 = vmatpush.bf16.msrb.mxu2 %v3303_v46  ;;  %v3947_v45 = vld [vmem:[#allocation5 + $0x98] sm:$0xff]  ;;  %v3937_v46 = vld [vmem:[#allocation5 + $0x48] sm:$0xff] }
 0x107   :  { %2045 = vmatpush.bf16.msrb.mxu3 %v3431_v51  ;;  %v2053_v51 = vmax.f32 %v4173_v52, 0.0  ;;  %v323_v52 = vperm.slane %v4163_v26, 2 }
 0x108   :  { %2007 = vmatpush.bf16.msrb.mxu0 %v3031_v59 }
 0x109   :  { %v2057_v55 = vpack.c.bf16 %v2053_v51, %v2053_v51 }
 0x10a   :  { %2020 = vmatpush.bf16.msrb.mxu1 %v3159_v60  ;;  %2033 = vmatpush.bf16.msrb.mxu2 %v3287_v61  ;;  %v3945_v61 = vld [vmem:[#allocation5 + $0x88] sm:$0xff] }
 0x10b   :  { %2046 = vmatpush.bf16.msrb.mxu3 %v3415_v2 }
 0x10c   :  { %2008 = vmatpush.bf16.msrb.mxu0 %v3015_v20  ;;  %v1802_v27 = vpop.f32.mrf.mxu0 }
 0x10d   :  { %v1803_v28 = vadd.f32 %v1802_v27, %v1790_v21  ;;  %v3955_v27 = vld [vmem:[#allocation5 + $0xd8] sm:$0xff] }
 0x10e   :  { %2021 = vmatpush.bf16.msrb.mxu1 %v3143_v22  ;;  %2034 = vmatpush.bf16.msrb.mxu2 %v3271_v9  ;;  %v1815_v29 = vpop.f32.mrf.mxu1 }
 0x10f   :  { %2047 = vmatpush.bf16.msrb.mxu3 %v3399_v10  ;;  %2009 = vmatmul.bf16.vlgmr.msrb.gmra.mxu0 %v4138_v41  ;;  %v3940_v41 = vld [vmem:[#allocation5 + $0x60] sm:$0xff] }
 0x110   :  { %2321 = vmatpush.bf16.msra.mxu0 %v3935_v11  ;;  %v3959_v11 = vld [vmem:[#allocation5 + $0xf8] sm:$0xff] }
 0x111   :  { %2022 = vmatmul.bf16.vlgmr.msrb.gmra.mxu1 %v4142_v44  ;;  %2035 = vmatmul.bf16.vlgmr.msrb.gmra.mxu2 %v4136_v38  ;;  %v3931_v38 = vld [vmem:[#allocation5 + $0x18] sm:$0xff]  ;;  %v1816_v44 = vadd.f32 %v1815_v29, %v1803_v28 }
 0x112   :  { %2334 = vmatpush.bf16.msra.mxu1 %v3943_v12  ;;  %2048 = vmatmul.bf16.vlgmr.msrb.gmra.mxu3 %v4140_v42  ;;  %v3939_v42 = vld [vmem:[#allocation5 + $0x58] sm:$0xff] }
 0x113   :  { %2347 = vmatpush.bf16.msra.mxu2 %v3951_v16  ;;  %2360 = vmatpush.bf16.msra.mxu3 %v3959_v11 }
 0x114   :  { %2322 = vmatpush.bf16.msra.mxu0 %v3934_v15  ;;  %v1828_v31 = vpop.f32.mrf.mxu2  ;;  %v1804_v36 = vpop.f32.mrf.mxu0  ;;  %v3958_v15 = vld [vmem:[#allocation5 + $0xf0] sm:$0xff] }
 0x115   :  { %v1829_v35 = vadd.f32 %v1828_v31, %v1816_v44  ;;  %v3952_v31 = vld [vmem:[#allocation5 + $0xc0] sm:$0xff] }
 0x116   :  { %2335 = vmatpush.bf16.msra.mxu1 %v3942_v8  ;;  %v1817_v40 = vpop.f32.mrf.mxu1 }
 0x117   :  { %2348 = vmatpush.bf16.msra.mxu2 %v3950_v30  ;;  %v1841_v32 = vpop.f32.mrf.mxu3  ;;  %2361 = vmatpush.bf16.msra.mxu3 %v3958_v15  ;;  %v3953_v30 = vld [vmem:[#allocation5 + $0xc8] sm:$0xff] }
 0x118   :  { %2323 = vmatpush.bf16.msra.mxu0 %v3933_v13  ;;  %v1842_v24 = vadd.f32 %v1841_v32, %v1829_v35  ;;  %v3957_v13 = vld [vmem:[#allocation5 + $0xe8] sm:$0xff] }
 0x11a   :  { %2336 = vmatpush.bf16.msra.mxu1 %v3941_v23  ;;  %v2054_v49 = vmax.f32 %v1842_v24, 0.0 }
 0x11b   :  { %2349 = vmatpush.bf16.msra.mxu2 %v3949_v33  ;;  %2362 = vmatpush.bf16.msra.mxu3 %v3957_v13  ;;  %v324_v33 = vperm.slane %v4163_v26, 3 }
 0x11c   :  { %2324 = vmatpush.bf16.msra.mxu0 %v3932_v25  ;;  %v1830_v47 = vpop.f32.mrf.mxu2  ;;  %v2058_v54 = vpack.c.bf16 %v2054_v49, %v2054_v49  ;;  %v3956_v25 = vld [vmem:[#allocation5 + $0xe0] sm:$0xff] }
 0x11e   :  { %2337 = vmatpush.bf16.msra.mxu1 %v3940_v41  ;;  %v3954_v41 = vld [vmem:[#allocation5 + $0xd0] sm:$0xff] }
 0x11f   :  { %2350 = vmatpush.bf16.msra.mxu2 %v3948_v37  ;;  %v1843_v48 = vpop.f32.mrf.mxu3  ;;  %2363 = vmatpush.bf16.msra.mxu3 %v3956_v25 }
 0x120   :  { %2325 = vmatpush.bf16.msra.mxu0 %v3931_v38 }
 0x122   :  { %2338 = vmatpush.bf16.msra.mxu1 %v3939_v42 }
 0x123   :  { %2351 = vmatpush.bf16.msra.mxu2 %v3947_v45  ;;  %2364 = vmatpush.bf16.msra.mxu3 %v3955_v27 }
 0x124   :  { %2326 = vmatpush.bf16.msra.mxu0 %v3930_v34 }
 0x126   :  { %2339 = vmatpush.bf16.msra.mxu1 %v3938_v39 }
 0x127   :  { %2352 = vmatpush.bf16.msra.mxu2 %v3946_v58  ;;  %2365 = vmatpush.bf16.msra.mxu3 %v3954_v41 }
 0x128   :  { %2327 = vmatpush.bf16.msra.mxu0 %v3929_v43 }
 0x12a   :  { %2340 = vmatpush.bf16.msra.mxu1 %v3937_v46 }
 0x12b   :  { %2353 = vmatpush.bf16.msra.mxu2 %v3945_v61  ;;  %2366 = vmatpush.bf16.msra.mxu3 %v3953_v30 }
 0x12c   :  { %2328 = vmatpush.bf16.msra.mxu0 %v3928_v50  ;;  %v1854_v56 = vpop.f32.mrf.mxu0 }
 0x12d   :  { %v1855_v18 = vadd.f32 %v1854_v56, %v323_v52  ;;  %v3966_v52 = vld [vmem:[%s4240_s5 + $0x30] sm:$0xff] }
 0x12e   :  { %2341 = vmatpush.bf16.msra.mxu1 %v3936_v53  ;;  %v1867_v57 = vpop.f32.mrf.mxu1 }
 0x12f   :  { %2329 = vmatmul.bf16.vlgmr.msra.gmra.mxu0 %v2057_v55  ;;  %2354 = vmatpush.bf16.msra.mxu2 %v3944_v0  ;;  %v1868_v3 = vadd.f32 %v1867_v57, %v1855_v18  ;;  %v3975_v57 = vld [vmem:[%s4239_s4] ss:$0 sm:$0xff]  ;;  %v3967_v0 = vld [vmem:[%s4240_s5 + $0x38] sm:$0xff] }
 0x130   :  { %2367 = vmatpush.bf16.msra.mxu3 %v3952_v31  ;;  %2443 = vmatpush.bf16.msrb.mxu0 %v3967_v0  ;;  %v3963_v18 = vld [vmem:[%s4240_s5 + $0x18] sm:$0xff] }
 0x131   :  { %2342 = vmatmul.bf16.vlgmr.msra.gmra.mxu1 %v2058_v54 }
 0x134   :  { %v1880_v59 = vpop.f32.mrf.mxu2  ;;  %v1856_v62 = vpop.f32.mrf.mxu0  ;;  %2444 = vmatpush.bf16.msrb.mxu0 %v3966_v52 }
 0x135   :  { %v1881_v4 = vadd.f32 %v1880_v59, %v1868_v3  ;;  %v3962_v3 = vld [vmem:[%s4240_s5 + $0x10] sm:$0xff] }
 0x136   :  { %v1869_v63 = vpop.f32.mrf.mxu1 }
 0x137   :  { %v1893_v60 = vpop.f32.mrf.mxu3 }
 0x138   :  { %v1894_v5 = vadd.f32 %v1893_v60, %v1881_v4 }
 0x13c   :  { %v1882_v1 = vpop.f32.mrf.mxu2 }
 0x13d   :  { %v3965_v1 = vld [vmem:[%s4240_s5 + $0x28] sm:$0xff] }
 0x13e   :  { %2445 = vmatpush.bf16.msrb.mxu0 %v3965_v1 }
 0x13f   :  { %v1895_v2 = vpop.f32.mrf.mxu3 }
 0x140   :  { %v3964_v2 = vld [vmem:[%s4240_s5 + $0x20] sm:$0xff] }
 0x142   :  { %2446 = vmatpush.bf16.msrb.mxu0 %v3964_v2 }
 0x146   :  { %2447 = vmatpush.bf16.msrb.mxu0 %v3963_v18 }
 0x14a   :  { %2448 = vmatpush.bf16.msrb.mxu0 %v3962_v3 }
 0x14c   :  { %v1906_v6 = vpop.f32.mrf.mxu0 }
 0x14d   :  { %v1907_v7 = vadd.f32 %v1906_v6, %v1894_v5  ;;  %v3961_v6 = vld [vmem:[%s4240_s5 + $0x8] sm:$0xff] }
 0x14e   :  { %v1919_v19 = vpop.f32.mrf.mxu1  ;;  %2449 = vmatpush.bf16.msrb.mxu0 %v3961_v6 }
 0x14f   :  { %v1920_v20 = vadd.f32 %v1919_v19, %v1907_v7  ;;  %v3960_v7 = vld [vmem:[%s4240_s5] sm:$0xff]  ;;  %s4065_s5 = smov [#allocation7]  }
 0x152   :  { %2450 = vmatpush.bf16.msrb.mxu0 %v3960_v7 }
 0x154   :  { %v1932_v22 = vpop.f32.mrf.mxu2  ;;  %v1908_v14 = vpop.f32.mrf.mxu0 }
 0x155   :  { %v1933_v9 = vadd.f32 %v1932_v22, %v1920_v20 }
 0x156   :  { %v1921_v16 = vpop.f32.mrf.mxu1 }
 0x157   :  { %v1945_v10 = vpop.f32.mrf.mxu3 }
 0x158   :  { %v1946_v12 = vadd.f32 %v1945_v10, %v1933_v9 }
 0x15a   :  { %v2055_v8 = vmax.f32 %v1946_v12, 0.0  ;;  %v3976_v12 = vld [vmem:[%s4241_s6] ss:$0 sm:$0xff]  ;;  %s2475_s6 = sshll.u32 %s4065_s5, 4  ;;  %s2476_s6 = int_to_ptr.vmem [resolvable:$true] %s2475_s6 }
 0x15c   :  { %v2059_v17 = vpack.c.bf16 %v2055_v8, %v2055_v8  ;;  %v1934_v21 = vpop.f32.mrf.mxu2 }
 0x15e   :  { %2355 = vmatmul.bf16.vlgmr.msra.gmra.mxu2 %v2059_v17 }
 0x15f   :  { %v1947_v23 = vpop.f32.mrf.mxu3 }
 0x16c   :  { %v1958_v28 = vpop.f32.mrf.mxu0 }
 0x16d   :  { %v1959_v36 = vadd.f32 %v1958_v28, %v324_v33 }
 0x16e   :  { %v1971_v29 = vpop.f32.mrf.mxu1 }
 0x16f   :  { %v1972_v37 = vadd.f32 %v1971_v29, %v1959_v36 }
 0x174   :  { %v1984_v38 = vpop.f32.mrf.mxu2  ;;  %v1960_v42 = vpop.f32.mrf.mxu0 }
 0x175   :  { %v1985_v39 = vadd.f32 %v1984_v38, %v1972_v37 }
 0x176   :  { %v1973_v32 = vpop.f32.mrf.mxu1 }
 0x177   :  { %v1997_v44 = vpop.f32.mrf.mxu3 }
 0x178   :  { %v1998_v40 = vadd.f32 %v1997_v44, %v1985_v39 }
 0x17c   :  { %v1986_v34 = vpop.f32.mrf.mxu2 }
 0x17f   :  { %v1999_v35 = vpop.f32.mrf.mxu3 }
 0x18c   :  { %v2010_v24 = vpop.f32.mrf.mxu0 }
 0x18d   :  { %v2011_v45 = vadd.f32 %v2010_v24, %v1998_v40 }
 0x18e   :  { %v2023_v43 = vpop.f32.mrf.mxu1 }
 0x18f   :  { %v2024_v46 = vadd.f32 %v2023_v43, %v2011_v45 }
 0x194   :  { %v2036_v47 = vpop.f32.mrf.mxu2  ;;  %v2012_v50 = vpop.f32.mrf.mxu0 }
 0x195   :  { %v2037_v48 = vadd.f32 %v2036_v47, %v2024_v46  ;;  %v2049_v49 = vpop.f32.mrf.mxu3 }
 0x196   :  { %v2025_v51 = vpop.f32.mrf.mxu1 }
 0x197   :  { %v2050_v53 = vadd.f32 %v2049_v49, %v2037_v48 }
 0x199   :  { %v2056_v54 = vmax.f32 %v2050_v53, 0.0 }
 0x19b   :  { %v2060_v55 = vpack.c.bf16 %v2056_v54, %v2056_v54 }
 0x19c   :  { %v2038_v56 = vpop.f32.mrf.mxu2 }
 0x19d   :  { %v2051_v26 = vpop.f32.mrf.mxu3  ;;  %2368 = vmatmul.bf16.vlgmr.msra.gmra.mxu3 %v2060_v55 }
 0x1ac   :  { %v2330_v58 = vpop.f32.mrf.mxu0 }
 0x1ad   :  { %v2331_v59 = vadd.f32 %v3975_v57, %v2330_v58 }
 0x1ae   :  { %v2343_v60 = vpop.f32.mrf.mxu1 }
 0x1af   :  { %v2344_v61 = vadd.f32 %v2343_v60, %v2331_v59 }
 0x1b4   :  { %v2332_v62 = vpop.f32.mrf.mxu0 }
 0x1b6   :  { %v2345_v63 = vpop.f32.mrf.mxu1 }
 0x1e1   :  { %v2356_v4 = vpop.f32.mrf.mxu2 }
 0x1e2   :  { %v2357_v19 = vadd.f32 %v2356_v4, %v2344_v61 }
 0x1e9   :  { %v2358_v5 = vpop.f32.mrf.mxu2 }
 0x220   :  { %v2369_v20 = vpop.f32.mrf.mxu3 }
 0x221   :  { %v2370_v22 = vadd.f32 %v2369_v20, %v2357_v19 }
 0x223   :  { %v2373_v9 = vmax.f32 %v2370_v22, 0.0 }
 0x225   :  { %v2374_v10 = vpack.c.bf16 %v2373_v9, %v2373_v9 }
 0x227   :  { %2451 = vmatmul.bf16.vlgmr.msrb.gmra.mxu0 %v2374_v10 }
 0x228   :  { %v2371_v11 = vpop.f32.mrf.mxu3 }
 0x2a4   :  { %v2452_v14 = vpop.f32.mrf.mxu0 }
 0x2a5   :  { %v2453_v15 = vadd.f32 %v3976_v12, %v2452_v14 }
 0x2a7   :  { %v2457_v16 = vsel %vm2456_vm0, %v2453_v15, -inf }
 0x2a8   :  { %2458 = vmax.xlane.f32.xlu0 %v2457_v16 }
 0x2ac   :  { %v2454_v8 = vpop.f32.mrf.mxu0 }
 0x31b   :  { %v2459_v17 = vpop.xlane.xlu0 %2458 }
 0x31c   :  { %v2460_v13 = vsub.f32 %v2453_v15, %v2459_v17 }
 0x31e   :  { %v2461_v21 = vmul.f32 1.442695, %v2460_v13 }
 0x320   :  { %3977 = vpow2.f32 %v2461_v21 }
 0x326   :  { %v3978_v23 = vpop.eup %3977 }
 0x327   :  { %v2463_v25 = vsel %vm2456_vm0, %v3978_v23, 0.0 }
 0x328   :  { %2464 = vadd.xlane.f32.xlu0 %v2463_v25 }
 0x39b   :  { %v2465_v27 = vpop.xlane.xlu0 %2464 }
 0x39c   :  { %3979 = vlog2.f32 %v2465_v27 }
 0x3a2   :  { %v3980_v41 = vpop.eup %3979 }
 0x3a3   :  { %v2467_v28 = vmul.f32 0.6931472, %v3980_v41 }
 0x3a5   :  { %v2468_v29 = vsub.f32 %v2460_v13, %v2467_v28 }
 0x3a7   :  { %2469 = vst.msk [vmem:[#allocation7] sm:$0xff] %vm2456_vm0, %v2468_v29 }
 0x3a8   :  { %2480 = dma.vmem_to_hbm [thread:$0]  %s2476_s6, 128, %s2478_s17, [#allocation4]  }
 0x3a9   :  { %4057 = dma.done.wait [#allocation4], 128  }
 0x3aa   :  { %4058 = vsyncadd [#allocation4], 4294967168 }
 0x3ab   :  { %2485 = vsyncpa [#allocation3], 1 }
 0x3ac   :  { %2486 = vsyncpa [#allocation6], 1 }
 0x3ad   :  { %2487 = vsyncpa [#allocation4], 1 }

</bundles_post_ra>
